<compile_context>
chip_gen: v5e
topology: v5e:2x2
jax: 0.10.0
libtpu: 0.0.40
codegen_flags: <defaults>
</compile_context>

<pallas_src>
import functools

import jax
import jax.numpy as jnp
from jax.experimental import pallas as pl
from jax.experimental.pallas import tpu as pltpu


# ---------------------------------------------------------------------------
# Pallas kernel: one SelfAttLayer forward for (batch element b, query tile qi)
# ---------------------------------------------------------------------------
def _self_att_layer_kernel(
    # inputs
    x_ref,          # [1, T, D]   f32  (full sequence of this batch element)
    bias_ref,       # [1, TQ, T]  f32  additive attention bias (0 / -1e9)
    ln1_g_ref, ln1_b_ref,   # [1, D] f32
    wqkv_ref, bqkv_ref,     # [D, 3D] bf16, [1, 3D] f32
    wo_ref, bo_ref,         # [D, D]  bf16, [1, D]  f32
    ln2_g_ref, ln2_b_ref,   # [1, D] f32
    w1_ref, b1_ref,         # [D, Dff] bf16, [1, Dff] f32
    w2_ref, b2_ref,         # [Dff, D] bf16, [1, D]  f32
    # output
    out_ref,        # [1, TQ, D]
    # scratch (persist across the query-tile axis for a given batch element)
    q_s, k_s, v_s,  # [H, T, dk] bf16 each
    *,
    n_heads: int,
    tq: int,
):
    qi = pl.program_id(1)
    T, D = x_ref.shape[1], x_ref.shape[2]
    dk = D // n_heads
    f32, bf16 = jnp.float32, jnp.bfloat16

    def layer_norm(v, g, b):
        # Annotated-Transformer style LayerNorm:
        #   g * (x - mean) / (std + eps) + b, unbiased std (torch default).
        n = v.shape[-1]
        mean = jnp.mean(v, axis=-1, keepdims=True)
        c = v - mean
        var = jnp.sum(c * c, axis=-1, keepdims=True) * (1.0 / (n - 1))
        inv = pl.reciprocal(jnp.sqrt(var) + 1e-6)      # EUP, frees VALU slots
        return g * c * inv + b

    # ---- once per batch element: LN1 + fused QKV projection for all T rows --
    @pl.when(qi == 0)
    def _():
        x_all = x_ref[0].astype(f32)                                  # [T, D]
        xn = layer_norm(x_all, ln1_g_ref[...], ln1_b_ref[...])
        qkv = jnp.dot(xn.astype(bf16), wqkv_ref[...],
                      preferred_element_type=f32) + bqkv_ref[...]     # [T, 3D]
        scale = 1.0 / (dk ** 0.5)
        q_all = qkv[:, :D] * scale                                    # [T, D]
        for h in range(n_heads):        # static loop: lane-slice per head
            q_s[h] = q_all[:, h * dk:(h + 1) * dk].astype(bf16)
            k_s[h] = qkv[:, D + h * dk:D + (h + 1) * dk].astype(bf16)
            v_s[h] = qkv[:, 2 * D + h * dk:2 * D + (h + 1) * dk].astype(bf16)

    # ---- per query tile: attention + residual + LN2 + FFN + residual --------
    row0 = pl.multiple_of(qi * tq, tq)
    x_t = x_ref[0, pl.ds(row0, tq), :].astype(f32)                    # [TQ, D]
    bias = bias_ref[0]                                                # [TQ, T]

    q3 = q_s[:, pl.ds(row0, tq), :]                                   # [H, TQ, dk]
    k3 = k_s[...]                                                     # [H, T, dk]
    v3 = v_s[...]                                                     # [H, T, dk]

    # TODO(synk): for very long T, switch to flash-style online softmax over
    # KV blocks instead of the full [H, TQ, T] score tensor per tile.
    s = jnp.einsum("hqd,hkd->hqk", q3, k3,
                   preferred_element_type=f32)                        # [H, TQ, T]
    s = s + bias[None, :, :]
    m = jnp.max(s, axis=-1, keepdims=True)
    e = jnp.exp(s - m)
    p = e * pl.reciprocal(jnp.sum(e, axis=-1, keepdims=True), approx=True)

    o = jnp.einsum("hqk,hkd->hqd", p.astype(bf16), v3,
                   preferred_element_type=f32)                        # [H, TQ, dk]

    # Output projection: concat heads along lanes -> ONE lane-dense [TQ, D]
    # operand, single K = D matmul against Wo (fills the MXU contraction dim
    # instead of n_heads separate K = dk pushes).
    o_cat = jnp.concatenate([o[h] for h in range(n_heads)], axis=-1)  # [TQ, D]
    x1 = x_t + jnp.dot(o_cat.astype(bf16), wo_ref[...],
                       preferred_element_type=f32) + bo_ref[...]

    xn2 = layer_norm(x1, ln2_g_ref[...], ln2_b_ref[...])
    h1 = jnp.dot(xn2.astype(bf16), w1_ref[...],
                 preferred_element_type=f32) + b1_ref[...]
    h1 = jnp.maximum(h1, 0.0)                                         # ReLU
    ff = jnp.dot(h1.astype(bf16), w2_ref[...],
                 preferred_element_type=f32) + b2_ref[...]

    out_ref[0] = (x1 + ff).astype(out_ref.dtype)


# ---------------------------------------------------------------------------
# Wrapper: one pallas_call per layer
# ---------------------------------------------------------------------------
def self_att_layer(x, bias, params, n_heads, tq=None):
    """x: [B, T, D] f32, bias: [B, T, T] f32 additive mask, params: one layer."""
    B, T, D = x.shape
    assert D % n_heads == 0
    dk = D // n_heads
    if tq is None:
        tq = min(T, 128)
    assert T % tq == 0, "query tile must divide T"
    nq = T // tq

    # Whole-array, VMEM-resident weights (no per-grid-step double buffering).
    wspec = pl.BlockSpec(memory_space=pltpu.MemorySpace.VMEM)

    in_specs = [
        pl.BlockSpec((1, T, D), lambda b, q: (b, 0, 0)),   # full sequence
        pl.BlockSpec((1, tq, T), lambda b, q: (b, q, 0)),  # bias rows of tile
    ] + [wspec] * 12

    kernel = functools.partial(_self_att_layer_kernel, n_heads=n_heads, tq=tq)

    return pl.pallas_call(
        kernel,
        out_shape=jax.ShapeDtypeStruct((B, T, D), x.dtype),
        grid=(B, nq),
        in_specs=in_specs,
        out_specs=pl.BlockSpec((1, tq, D), lambda b, q: (b, q, 0)),
        scratch_shapes=[pltpu.VMEM((n_heads, T, dk), jnp.bfloat16)] * 3,
        compiler_params=pltpu.CompilerParams(
            # b is independent (megacore); the query-tile axis carries the
            # q/k/v scratch computed at qi == 0, so it must stay "arbitrary".
            dimension_semantics=("parallel", "arbitrary"),
            vmem_limit_bytes=48 * 1024 * 1024,
        ),
    )(
        x, bias,
        params["ln1_g"], params["ln1_b"],
        params["wqkv"], params["bqkv"],
        params["wo"], params["bo"],
        params["ln2_g"], params["ln2_b"],
        params["w1"], params["b1"],
        params["w2"], params["b2"],
    )


def self_att_decoder(x, mask, layer_params, n_heads, tq=None,
                     interce_alpha=0, interce_layer=4):
    """Mirrors SelfAttDecoder.forward: pass x (and mask) through each layer."""
    # mask [B, 1, T, T] in {0,1}  ->  additive bias [B, T, T] (0 or -1e9),
    # built once instead of DMA-ing / compare+select per layer.
    bias = (mask[:, 0, :, :].astype(jnp.float32) - 1.0) * 1e9
    # TODO(synk): overlap next-layer weight HBM->VMEM load with current layer
    # compute (cross-call DMA future / fused layer grid axis).
    interce_out = None
    for n_layer, params in enumerate(layer_params):
        x = self_att_layer(x, bias, params, n_heads, tq=tq)
        if interce_alpha > 0 and n_layer == interce_layer - 1:
            interce_out = x
    if interce_alpha > 0:
        return x, interce_out
    return x


# ---------------------------------------------------------------------------
# Deterministic parameter construction (synthetic, no checkpoint)
# ---------------------------------------------------------------------------
def make_layer_params(key, d_model, d_ff):
    ks = jax.random.split(key, 6)
    s = 0.02
    f32, bf16 = jnp.float32, jnp.bfloat16
    wq = s * jax.random.normal(ks[0], (d_model, d_model), f32)
    wk = s * jax.random.normal(ks[1], (d_model, d_model), f32)
    wv = s * jax.random.normal(ks[2], (d_model, d_model), f32)
    return {
        "ln1_g": jnp.ones((1, d_model), f32),
        "ln1_b": jnp.zeros((1, d_model), f32),
        # fused QKV weight, stored bf16 (MXU operand dtype)
        "wqkv": jnp.concatenate([wq, wk, wv], axis=1).astype(bf16),
        "bqkv": jnp.zeros((1, 3 * d_model), f32),
        "wo": (s * jax.random.normal(ks[3], (d_model, d_model), f32)).astype(bf16),
        "bo": jnp.zeros((1, d_model), f32),
        "ln2_g": jnp.ones((1, d_model), f32),
        "ln2_b": jnp.zeros((1, d_model), f32),
        "w1": (s * jax.random.normal(ks[4], (d_model, d_ff), f32)).astype(bf16),
        "b1": jnp.zeros((1, d_ff), f32),
        "w2": (s * jax.random.normal(ks[5], (d_ff, d_model), f32)).astype(bf16),
        "b2": jnp.zeros((1, d_model), f32),
    }


# ---------------------------------------------------------------------------
# Pure-JAX f32 reference (same math) for a sanity check
# ---------------------------------------------------------------------------
def self_att_decoder_ref(x, mask, layer_params, n_heads):
    def ln(v, g, b):
        n = v.shape[-1]
        mean = jnp.mean(v, -1, keepdims=True)
        var = jnp.sum((v - mean) ** 2, -1, keepdims=True) / (n - 1)
        return g * (v - mean) / (jnp.sqrt(var) + 1e-6) + b

    B, T, D = x.shape
    dk = D // n_heads
    for p in layer_params:
        w = lambda a: a.astype(jnp.float32)
        xn = ln(x, w(p["ln1_g"]), w(p["ln1_b"]))
        qkv = xn @ w(p["wqkv"]) + w(p["bqkv"])
        q, k, v = jnp.split(qkv, 3, axis=-1)
        q = q.reshape(B, T, n_heads, dk)
        k = k.reshape(B, T, n_heads, dk)
        v = v.reshape(B, T, n_heads, dk)
        s = jnp.einsum("bqhd,bkhd->bhqk", q, k) / (dk ** 0.5)
        s = jnp.where(mask == 0, -1e9, s)
        pr = jax.nn.softmax(s, axis=-1)
        o = jnp.einsum("bhqk,bkhd->bqhd", pr, v).reshape(B, T, D)
        x = x + o @ w(p["wo"]) + w(p["bo"])
        xn2 = ln(x, w(p["ln2_g"]), w(p["ln2_b"]))
        h1 = jnp.maximum(xn2 @ w(p["w1"]) + w(p["b1"]), 0.0)
        x = x + h1 @ w(p["w2"]) + w(p["b2"])
    return x


if __name__ == "__main__":
    # Small but lane-dense shapes: d_model = 128 (multiple of 128), 4 heads,
    # d_ff = 256, N = 2 layers, batch = 2, seq = 16, query tile = 8
    # (so the query-tile grid axis is actually exercised: grid = (2, 2)).
    B, T, D, H, DFF, N, TQ = 2, 16, 128, 4, 256, 2, 8

    key = jax.random.PRNGKey(0)
    k_x, k_p = jax.random.split(key)
    x = jax.random.normal(k_x, (B, T, D), jnp.float32)

    # self_mask: [B, 1, T, T]; mask out the last 3 key positions of batch 1
    # to exercise the masking path.
    mask = jnp.ones((B, 1, T, T), jnp.float32)
    mask = mask.at[1, 0, :, T - 3:].set(0.0)

    layer_keys = jax.random.split(k_p, N)
    layer_params = [make_layer_params(layer_keys[i], D, DFF) for i in range(N)]

    out = self_att_decoder(x, mask, layer_params, n_heads=H, tq=TQ)
    out = jax.block_until_ready(out)

    assert out.shape == (B, T, D)
    assert jnp.all(jnp.isfinite(out))

    ref = self_att_decoder_ref(x, mask, layer_params, n_heads=H)
    max_err = float(jnp.max(jnp.abs(out - ref)))
    assert max_err < 5e-2, f"max abs err {max_err}"

    print("KERNEL_OK")
</pallas_src>

<mosaic_0001>
module attributes {stable_mosaic.version = 11 : i64} {
  func.func @_self_att_layer_kernel(%arg0: i32, %arg1: i32, %arg2: memref<1x16x128xf32, #tpu.memory_space<vmem>>, %arg3: memref<1x8x16xf32, #tpu.memory_space<vmem>>, %arg4: memref<1x128xf32, #tpu.memory_space<vmem>>, %arg5: memref<1x128xf32, #tpu.memory_space<vmem>>, %arg6: memref<128x384xbf16, #tpu.memory_space<vmem>>, %arg7: memref<1x384xf32, #tpu.memory_space<vmem>>, %arg8: memref<128x128xbf16, #tpu.memory_space<vmem>>, %arg9: memref<1x128xf32, #tpu.memory_space<vmem>>, %arg10: memref<1x128xf32, #tpu.memory_space<vmem>>, %arg11: memref<1x128xf32, #tpu.memory_space<vmem>>, %arg12: memref<128x256xbf16, #tpu.memory_space<vmem>>, %arg13: memref<1x256xf32, #tpu.memory_space<vmem>>, %arg14: memref<256x128xbf16, #tpu.memory_space<vmem>>, %arg15: memref<1x128xf32, #tpu.memory_space<vmem>>, %arg16: memref<1x8x128xf32, #tpu.memory_space<vmem>>, %arg17: memref<4x16x32xbf16, #tpu.memory_space<vmem>>, %arg18: memref<4x16x32xbf16, #tpu.memory_space<vmem>>, %arg19: memref<4x16x32xbf16, #tpu.memory_space<vmem>>) attributes {dimension_semantics = [#tpu.dimension_semantics<parallel>, #tpu.dimension_semantics<arbitrary>], iteration_bounds = array<i64: 2, 2>, scalar_prefetch = 0 : i64, scratch_operands = 3 : i64, tpu.core_type = #tpu.core_type<tc>, window_params = [{transform_indices = @transform_0, window_bounds = array<i64: 1, 16, 128>}, {transform_indices = @transform_1, window_bounds = array<i64: 1, 8, 16>}, {pipeline_mode = #tpu.pipeline_mode<synchronous>, transform_indices = @transform_2, window_bounds = array<i64: 1, 128>}, {pipeline_mode = #tpu.pipeline_mode<synchronous>, transform_indices = @transform_3, window_bounds = array<i64: 1, 128>}, {pipeline_mode = #tpu.pipeline_mode<synchronous>, transform_indices = @transform_4, window_bounds = array<i64: 128, 384>}, {pipeline_mode = #tpu.pipeline_mode<synchronous>, transform_indices = @transform_5, window_bounds = array<i64: 1, 384>}, {pipeline_mode = #tpu.pipeline_mode<synchronous>, transform_indices = @transform_6, window_bounds = array<i64: 128, 128>}, {pipeline_mode = #tpu.pipeline_mode<synchronous>, transform_indices = @transform_7, window_bounds = array<i64: 1, 128>}, {pipeline_mode = #tpu.pipeline_mode<synchronous>, transform_indices = @transform_8, window_bounds = array<i64: 1, 128>}, {pipeline_mode = #tpu.pipeline_mode<synchronous>, transform_indices = @transform_9, window_bounds = array<i64: 1, 128>}, {pipeline_mode = #tpu.pipeline_mode<synchronous>, transform_indices = @transform_10, window_bounds = array<i64: 128, 256>}, {pipeline_mode = #tpu.pipeline_mode<synchronous>, transform_indices = @transform_11, window_bounds = array<i64: 1, 256>}, {pipeline_mode = #tpu.pipeline_mode<synchronous>, transform_indices = @transform_12, window_bounds = array<i64: 256, 128>}, {pipeline_mode = #tpu.pipeline_mode<synchronous>, transform_indices = @transform_13, window_bounds = array<i64: 1, 128>}, {transform_indices = @transform_14, window_bounds = array<i64: 1, 8, 128>}]} {
    %c0_i32 = arith.constant 0 : i32
    %0 = arith.cmpi eq, %arg1, %c0_i32 : i32
    %1 = arith.extui %0 : i1 to i32
    %c0_i32_0 = arith.constant 0 : i32
    %2 = arith.cmpi ne, %1, %c0_i32_0 : i32
    scf.if %2 {
      %c0_44 = arith.constant 0 : index
      %c0_45 = arith.constant 0 : index
      %c0_46 = arith.constant 0 : index
      %87 = vector.load %arg2[%c0_44, %c0_45, %c0_46] : memref<1x16x128xf32, #tpu.memory_space<vmem>>, vector<1x16x128xf32>
      %88 = vector.shape_cast %87 : vector<1x16x128xf32> to vector<16x128xf32>
      %c0_47 = arith.constant 0 : index
      %c0_48 = arith.constant 0 : index
      %89 = vector.load %arg4[%c0_47, %c0_48] : memref<1x128xf32, #tpu.memory_space<vmem>>, vector<1x128xf32>
      %c0_49 = arith.constant 0 : index
      %c0_50 = arith.constant 0 : index
      %90 = vector.load %arg5[%c0_49, %c0_50] : memref<1x128xf32, #tpu.memory_space<vmem>>, vector<1x128xf32>
      %cst_51 = arith.constant dense<0.000000e+00> : vector<16xf32>
      %91 = vector.multi_reduction <add>, %88, %cst_51 [1] : vector<16x128xf32> to vector<16xf32>
      %92 = vector.shape_cast %91 : vector<16xf32> to vector<16x1xf32>
      %cst_52 = arith.constant 1.280000e+02 : f32
      %93 = vector.broadcast %cst_52 : f32 to vector<16x1xf32>
      %94 = arith.divf %92, %93 : vector<16x1xf32>
      %95 = vector.broadcast %94 : vector<16x1xf32> to vector<16x128xf32>
      %96 = arith.subf %88, %95 : vector<16x128xf32>
      %97 = arith.mulf %96, %96 : vector<16x128xf32>
      %cst_53 = arith.constant dense<0.000000e+00> : vector<16xf32>
      %98 = vector.multi_reduction <add>, %97, %cst_53 [1] : vector<16x128xf32> to vector<16xf32>
      %99 = vector.shape_cast %98 : vector<16xf32> to vector<16x1xf32>
      %cst_54 = arith.constant 0.00787401571 : f32
      %100 = vector.broadcast %cst_54 : f32 to vector<16x1xf32>
      %101 = arith.mulf %99, %100 : vector<16x1xf32>
      %102 = math.sqrt %101 : vector<16x1xf32>
      %cst_55 = arith.constant 9.99999997E-7 : f32
      %103 = vector.broadcast %cst_55 : f32 to vector<16x1xf32>
      %104 = arith.addf %102, %103 : vector<16x1xf32>
      %105 = tpu.reciprocal %104 : vector<16x1xf32> -> vector<16x1xf32>
      %106 = vector.broadcast %89 : vector<1x128xf32> to vector<16x128xf32>
      %107 = arith.mulf %106, %96 : vector<16x128xf32>
      %108 = vector.broadcast %105 : vector<16x1xf32> to vector<16x128xf32>
      %109 = arith.mulf %107, %108 : vector<16x128xf32>
      %110 = vector.broadcast %90 : vector<1x128xf32> to vector<16x128xf32>
      %111 = arith.addf %109, %110 : vector<16x128xf32>
      %112 = arith.truncf %111 : vector<16x128xf32> to vector<16x128xbf16>
      %c0_56 = arith.constant 0 : index
      %c0_57 = arith.constant 0 : index
      %113 = vector.load %arg6[%c0_56, %c0_57] : memref<128x384xbf16, #tpu.memory_space<vmem>>, vector<128x384xbf16>
      %cst_58 = arith.constant dense<0.000000e+00> : vector<16x384xf32>
      %114 = tpu.matmul %112, %113, %cst_58 {dimension_numbers = #tpu.dot_dimension_numbers<[1], [0], [0], [1], [0, 0, 1, 1], [], []>} : vector<16x128xbf16>, vector<128x384xbf16>, vector<16x384xf32> -> vector<16x384xf32>
      %c0_59 = arith.constant 0 : index
      %c0_60 = arith.constant 0 : index
      %115 = vector.load %arg7[%c0_59, %c0_60] : memref<1x384xf32, #tpu.memory_space<vmem>>, vector<1x384xf32>
      %116 = vector.broadcast %115 : vector<1x384xf32> to vector<16x384xf32>
      %117 = arith.addf %114, %116 : vector<16x384xf32>
      %118 = vector.extract_strided_slice %117 {offsets = [0, 0], sizes = [16, 128], strides = [1, 1]} : vector<16x384xf32> to vector<16x128xf32>
      %cst_61 = arith.constant 0.176776692 : f32
      %119 = vector.broadcast %cst_61 : f32 to vector<16x128xf32>
      %120 = arith.mulf %118, %119 : vector<16x128xf32>
      %121 = vector.extract_strided_slice %120 {offsets = [0, 0], sizes = [16, 32], strides = [1, 1]} : vector<16x128xf32> to vector<16x32xf32>
      %122 = arith.truncf %121 : vector<16x32xf32> to vector<16x32xbf16>
      %c0_62 = arith.constant 0 : index
      %c0_63 = arith.constant 0 : index
      %c0_64 = arith.constant 0 : index
      %123 = vector.load %arg17[%c0_62, %c0_63, %c0_64] : memref<4x16x32xbf16, #tpu.memory_space<vmem>>, vector<1x16x32xbf16>
      %124 = vector.shape_cast %123 : vector<1x16x32xbf16> to vector<16x32xbf16>
      %125 = vector.shape_cast %122 : vector<16x32xbf16> to vector<1x16x32xbf16>
      tpu.vector_store %arg17[%c0_62, %c0_63, %c0_64], %125 {strides = array<i32>} : memref<4x16x32xbf16, #tpu.memory_space<vmem>>, vector<1x16x32xbf16>,
      %126 = vector.extract_strided_slice %117 {offsets = [0, 128], sizes = [16, 32], strides = [1, 1]} : vector<16x384xf32> to vector<16x32xf32>
      %127 = arith.truncf %126 : vector<16x32xf32> to vector<16x32xbf16>
      %c0_65 = arith.constant 0 : index
      %c0_66 = arith.constant 0 : index
      %c0_67 = arith.constant 0 : index
      %128 = vector.load %arg18[%c0_65, %c0_66, %c0_67] : memref<4x16x32xbf16, #tpu.memory_space<vmem>>, vector<1x16x32xbf16>
      %129 = vector.shape_cast %128 : vector<1x16x32xbf16> to vector<16x32xbf16>
      %130 = vector.shape_cast %127 : vector<16x32xbf16> to vector<1x16x32xbf16>
      tpu.vector_store %arg18[%c0_65, %c0_66, %c0_67], %130 {strides = array<i32>} : memref<4x16x32xbf16, #tpu.memory_space<vmem>>, vector<1x16x32xbf16>,
      %131 = vector.extract_strided_slice %117 {offsets = [0, 256], sizes = [16, 32], strides = [1, 1]} : vector<16x384xf32> to vector<16x32xf32>
      %132 = arith.truncf %131 : vector<16x32xf32> to vector<16x32xbf16>
      %c0_68 = arith.constant 0 : index
      %c0_69 = arith.constant 0 : index
      %c0_70 = arith.constant 0 : index
      %133 = vector.load %arg19[%c0_68, %c0_69, %c0_70] : memref<4x16x32xbf16, #tpu.memory_space<vmem>>, vector<1x16x32xbf16>
      %134 = vector.shape_cast %133 : vector<1x16x32xbf16> to vector<16x32xbf16>
      %135 = vector.shape_cast %132 : vector<16x32xbf16> to vector<1x16x32xbf16>
      tpu.vector_store %arg19[%c0_68, %c0_69, %c0_70], %135 {strides = array<i32>} : memref<4x16x32xbf16, #tpu.memory_space<vmem>>, vector<1x16x32xbf16>,
      %136 = vector.extract_strided_slice %120 {offsets = [0, 32], sizes = [16, 32], strides = [1, 1]} : vector<16x128xf32> to vector<16x32xf32>
      %137 = arith.truncf %136 : vector<16x32xf32> to vector<16x32xbf16>
      %c1 = arith.constant 1 : index
      %c0_71 = arith.constant 0 : index
      %c0_72 = arith.constant 0 : index
      %138 = vector.load %arg17[%c1, %c0_71, %c0_72] : memref<4x16x32xbf16, #tpu.memory_space<vmem>>, vector<1x16x32xbf16>
      %139 = vector.shape_cast %138 : vector<1x16x32xbf16> to vector<16x32xbf16>
      %140 = vector.shape_cast %137 : vector<16x32xbf16> to vector<1x16x32xbf16>
      tpu.vector_store %arg17[%c1, %c0_71, %c0_72], %140 {strides = array<i32>} : memref<4x16x32xbf16, #tpu.memory_space<vmem>>, vector<1x16x32xbf16>,
      %141 = vector.extract_strided_slice %117 {offsets = [0, 160], sizes = [16, 32], strides = [1, 1]} : vector<16x384xf32> to vector<16x32xf32>
      %142 = arith.truncf %141 : vector<16x32xf32> to vector<16x32xbf16>
      %c1_73 = arith.constant 1 : index
      %c0_74 = arith.constant 0 : index
      %c0_75 = arith.constant 0 : index
      %143 = vector.load %arg18[%c1_73, %c0_74, %c0_75] : memref<4x16x32xbf16, #tpu.memory_space<vmem>>, vector<1x16x32xbf16>
      %144 = vector.shape_cast %143 : vector<1x16x32xbf16> to vector<16x32xbf16>
      %145 = vector.shape_cast %142 : vector<16x32xbf16> to vector<1x16x32xbf16>
      tpu.vector_store %arg18[%c1_73, %c0_74, %c0_75], %145 {strides = array<i32>} : memref<4x16x32xbf16, #tpu.memory_space<vmem>>, vector<1x16x32xbf16>,
      %146 = vector.extract_strided_slice %117 {offsets = [0, 288], sizes = [16, 32], strides = [1, 1]} : vector<16x384xf32> to vector<16x32xf32>
      %147 = arith.truncf %146 : vector<16x32xf32> to vector<16x32xbf16>
      %c1_76 = arith.constant 1 : index
      %c0_77 = arith.constant 0 : index
      %c0_78 = arith.constant 0 : index
      %148 = vector.load %arg19[%c1_76, %c0_77, %c0_78] : memref<4x16x32xbf16, #tpu.memory_space<vmem>>, vector<1x16x32xbf16>
      %149 = vector.shape_cast %148 : vector<1x16x32xbf16> to vector<16x32xbf16>
      %150 = vector.shape_cast %147 : vector<16x32xbf16> to vector<1x16x32xbf16>
      tpu.vector_store %arg19[%c1_76, %c0_77, %c0_78], %150 {strides = array<i32>} : memref<4x16x32xbf16, #tpu.memory_space<vmem>>, vector<1x16x32xbf16>,
      %151 = vector.extract_strided_slice %120 {offsets = [0, 64], sizes = [16, 32], strides = [1, 1]} : vector<16x128xf32> to vector<16x32xf32>
      %152 = arith.truncf %151 : vector<16x32xf32> to vector<16x32xbf16>
      %c2 = arith.constant 2 : index
      %c0_79 = arith.constant 0 : index
      %c0_80 = arith.constant 0 : index
      %153 = vector.load %arg17[%c2, %c0_79, %c0_80] : memref<4x16x32xbf16, #tpu.memory_space<vmem>>, vector<1x16x32xbf16>
      %154 = vector.shape_cast %153 : vector<1x16x32xbf16> to vector<16x32xbf16>
      %155 = vector.shape_cast %152 : vector<16x32xbf16> to vector<1x16x32xbf16>
      tpu.vector_store %arg17[%c2, %c0_79, %c0_80], %155 {strides = array<i32>} : memref<4x16x32xbf16, #tpu.memory_space<vmem>>, vector<1x16x32xbf16>,
      %156 = vector.extract_strided_slice %117 {offsets = [0, 192], sizes = [16, 32], strides = [1, 1]} : vector<16x384xf32> to vector<16x32xf32>
      %157 = arith.truncf %156 : vector<16x32xf32> to vector<16x32xbf16>
      %c2_81 = arith.constant 2 : index
      %c0_82 = arith.constant 0 : index
      %c0_83 = arith.constant 0 : index
      %158 = vector.load %arg18[%c2_81, %c0_82, %c0_83] : memref<4x16x32xbf16, #tpu.memory_space<vmem>>, vector<1x16x32xbf16>
      %159 = vector.shape_cast %158 : vector<1x16x32xbf16> to vector<16x32xbf16>
      %160 = vector.shape_cast %157 : vector<16x32xbf16> to vector<1x16x32xbf16>
      tpu.vector_store %arg18[%c2_81, %c0_82, %c0_83], %160 {strides = array<i32>} : memref<4x16x32xbf16, #tpu.memory_space<vmem>>, vector<1x16x32xbf16>,
      %161 = vector.extract_strided_slice %117 {offsets = [0, 320], sizes = [16, 32], strides = [1, 1]} : vector<16x384xf32> to vector<16x32xf32>
      %162 = arith.truncf %161 : vector<16x32xf32> to vector<16x32xbf16>
      %c2_84 = arith.constant 2 : index
      %c0_85 = arith.constant 0 : index
      %c0_86 = arith.constant 0 : index
      %163 = vector.load %arg19[%c2_84, %c0_85, %c0_86] : memref<4x16x32xbf16, #tpu.memory_space<vmem>>, vector<1x16x32xbf16>
      %164 = vector.shape_cast %163 : vector<1x16x32xbf16> to vector<16x32xbf16>
      %165 = vector.shape_cast %162 : vector<16x32xbf16> to vector<1x16x32xbf16>
      tpu.vector_store %arg19[%c2_84, %c0_85, %c0_86], %165 {strides = array<i32>} : memref<4x16x32xbf16, #tpu.memory_space<vmem>>, vector<1x16x32xbf16>,
      %166 = vector.extract_strided_slice %120 {offsets = [0, 96], sizes = [16, 32], strides = [1, 1]} : vector<16x128xf32> to vector<16x32xf32>
      %167 = arith.truncf %166 : vector<16x32xf32> to vector<16x32xbf16>
      %c3 = arith.constant 3 : index
      %c0_87 = arith.constant 0 : index
      %c0_88 = arith.constant 0 : index
      %168 = vector.load %arg17[%c3, %c0_87, %c0_88] : memref<4x16x32xbf16, #tpu.memory_space<vmem>>, vector<1x16x32xbf16>
      %169 = vector.shape_cast %168 : vector<1x16x32xbf16> to vector<16x32xbf16>
      %170 = vector.shape_cast %167 : vector<16x32xbf16> to vector<1x16x32xbf16>
      tpu.vector_store %arg17[%c3, %c0_87, %c0_88], %170 {strides = array<i32>} : memref<4x16x32xbf16, #tpu.memory_space<vmem>>, vector<1x16x32xbf16>,
      %171 = vector.extract_strided_slice %117 {offsets = [0, 224], sizes = [16, 32], strides = [1, 1]} : vector<16x384xf32> to vector<16x32xf32>
      %172 = arith.truncf %171 : vector<16x32xf32> to vector<16x32xbf16>
      %c3_89 = arith.constant 3 : index
      %c0_90 = arith.constant 0 : index
      %c0_91 = arith.constant 0 : index
      %173 = vector.load %arg18[%c3_89, %c0_90, %c0_91] : memref<4x16x32xbf16, #tpu.memory_space<vmem>>, vector<1x16x32xbf16>
      %174 = vector.shape_cast %173 : vector<1x16x32xbf16> to vector<16x32xbf16>
      %175 = vector.shape_cast %172 : vector<16x32xbf16> to vector<1x16x32xbf16>
      tpu.vector_store %arg18[%c3_89, %c0_90, %c0_91], %175 {strides = array<i32>} : memref<4x16x32xbf16, #tpu.memory_space<vmem>>, vector<1x16x32xbf16>,
      %176 = vector.extract_strided_slice %117 {offsets = [0, 352], sizes = [16, 32], strides = [1, 1]} : vector<16x384xf32> to vector<16x32xf32>
      %177 = arith.truncf %176 : vector<16x32xf32> to vector<16x32xbf16>
      %c3_92 = arith.constant 3 : index
      %c0_93 = arith.constant 0 : index
      %c0_94 = arith.constant 0 : index
      %178 = vector.load %arg19[%c3_92, %c0_93, %c0_94] : memref<4x16x32xbf16, #tpu.memory_space<vmem>>, vector<1x16x32xbf16>
      %179 = vector.shape_cast %178 : vector<1x16x32xbf16> to vector<16x32xbf16>
      %180 = vector.shape_cast %177 : vector<16x32xbf16> to vector<1x16x32xbf16>
      tpu.vector_store %arg19[%c3_92, %c0_93, %c0_94], %180 {strides = array<i32>} : memref<4x16x32xbf16, #tpu.memory_space<vmem>>, vector<1x16x32xbf16>,
    } else {
    }
    %c8_i32 = arith.constant 8 : i32
    %3 = arith.muli %arg1, %c8_i32 : i32
    %4 = tpu.assume_multiple %3, 8 : i32
    %c0 = arith.constant 0 : index
    %5 = arith.index_cast %4 : i32 to index
    %c0_1 = arith.constant 0 : index
    %6 = vector.load %arg2[%c0, %5, %c0_1] : memref<1x16x128xf32, #tpu.memory_space<vmem>>, vector<1x8x128xf32>
    %7 = vector.shape_cast %6 : vector<1x8x128xf32> to vector<8x128xf32>
    %c0_2 = arith.constant 0 : index
    %c0_3 = arith.constant 0 : index
    %c0_4 = arith.constant 0 : index
    %8 = vector.load %arg3[%c0_2, %c0_3, %c0_4] : memref<1x8x16xf32, #tpu.memory_space<vmem>>, vector<1x8x16xf32>
    %9 = vector.shape_cast %8 : vector<1x8x16xf32> to vector<8x16xf32>
    %c0_5 = arith.constant 0 : index
    %10 = arith.index_cast %4 : i32 to index
    %c0_6 = arith.constant 0 : index
    %11 = vector.load %arg17[%c0_5, %10, %c0_6] : memref<4x16x32xbf16, #tpu.memory_space<vmem>>, vector<4x8x32xbf16>
    %c0_7 = arith.constant 0 : index
    %c0_8 = arith.constant 0 : index
    %c0_9 = arith.constant 0 : index
    %12 = vector.load %arg18[%c0_7, %c0_8, %c0_9] : memref<4x16x32xbf16, #tpu.memory_space<vmem>>, vector<4x16x32xbf16>
    %c0_10 = arith.constant 0 : index
    %c0_11 = arith.constant 0 : index
    %c0_12 = arith.constant 0 : index
    %13 = vector.load %arg19[%c0_10, %c0_11, %c0_12] : memref<4x16x32xbf16, #tpu.memory_space<vmem>>, vector<4x16x32xbf16>
    "tpu.trace_start"() <{level = 10 : i32, message = "hqd,hkd->hqk"}> : () -> ()
    %cst = arith.constant dense<0.000000e+00> : vector<4x8x16xf32>
    %14 = tpu.matmul %11, %12, %cst {dimension_numbers = #tpu.dot_dimension_numbers<[2], [2], [1], [1], [0, 0, 0, 1, 1, 1], [0], [0]>} : vector<4x8x32xbf16>, vector<4x16x32xbf16>, vector<4x8x16xf32> -> vector<4x8x16xf32>
    "tpu.trace_stop"() : () -> ()
    %15 = vector.shape_cast %9 : vector<8x16xf32> to vector<1x8x16xf32>
    %16 = vector.broadcast %15 : vector<1x8x16xf32> to vector<4x8x16xf32>
    %17 = arith.addf %14, %16 : vector<4x8x16xf32>
    %cst_13 = arith.constant dense<0xFF800000> : vector<4x8xf32>
    %18 = vector.multi_reduction <maximumf>, %17, %cst_13 [2] : vector<4x8x16xf32> to vector<4x8xf32>
    %19 = vector.shape_cast %18 : vector<4x8xf32> to vector<4x8x1xf32>
    %20 = vector.broadcast %19 : vector<4x8x1xf32> to vector<4x8x16xf32>
    %21 = arith.subf %17, %20 : vector<4x8x16xf32>
    %22 = math.exp %21 : vector<4x8x16xf32>
    %cst_14 = arith.constant dense<0.000000e+00> : vector<4x8xf32>
    %23 = vector.multi_reduction <add>, %22, %cst_14 [2] : vector<4x8x16xf32> to vector<4x8xf32>
    %24 = vector.shape_cast %23 : vector<4x8xf32> to vector<4x8x1xf32>
    %25 = tpu.reciprocal %24 {approx = true} : vector<4x8x1xf32> -> vector<4x8x1xf32>
    %26 = vector.broadcast %25 : vector<4x8x1xf32> to vector<4x8x16xf32>
    %27 = arith.mulf %22, %26 : vector<4x8x16xf32>
    %28 = arith.truncf %27 : vector<4x8x16xf32> to vector<4x8x16xbf16>
    "tpu.trace_start"() <{level = 10 : i32, message = "hqk,hkd->hqd"}> : () -> ()
    %cst_15 = arith.constant dense<0.000000e+00> : vector<4x8x32xf32>
    %29 = tpu.matmul %28, %13, %cst_15 {dimension_numbers = #tpu.dot_dimension_numbers<[2], [1], [1], [2], [0, 0, 0, 1, 1, 2], [0], [0]>} : vector<4x8x16xbf16>, vector<4x16x32xbf16>, vector<4x8x32xf32> -> vector<4x8x32xf32>
    "tpu.trace_stop"() : () -> ()
    %30 = vector.extract_strided_slice %29 {offsets = [0, 0, 0], sizes = [1, 8, 32], strides = [1, 1, 1]} : vector<4x8x32xf32> to vector<1x8x32xf32>
    %31 = vector.shape_cast %30 : vector<1x8x32xf32> to vector<8x32xf32>
    %32 = vector.extract_strided_slice %29 {offsets = [1, 0, 0], sizes = [1, 8, 32], strides = [1, 1, 1]} : vector<4x8x32xf32> to vector<1x8x32xf32>
    %33 = vector.shape_cast %32 : vector<1x8x32xf32> to vector<8x32xf32>
    %34 = vector.extract_strided_slice %29 {offsets = [2, 0, 0], sizes = [1, 8, 32], strides = [1, 1, 1]} : vector<4x8x32xf32> to vector<1x8x32xf32>
    %35 = vector.shape_cast %34 : vector<1x8x32xf32> to vector<8x32xf32>
    %36 = vector.extract_strided_slice %29 {offsets = [3, 0, 0], sizes = [1, 8, 32], strides = [1, 1, 1]} : vector<4x8x32xf32> to vector<1x8x32xf32>
    %37 = vector.shape_cast %36 : vector<1x8x32xf32> to vector<8x32xf32>
    %38 = tpu.concatenate %31, %33, %35, %37 in 1 : vector<8x32xf32>, vector<8x32xf32>, vector<8x32xf32>, vector<8x32xf32> -> vector<8x128xf32>
    %39 = arith.truncf %38 : vector<8x128xf32> to vector<8x128xbf16>
    %c0_16 = arith.constant 0 : index
    %c0_17 = arith.constant 0 : index
    %40 = vector.load %arg8[%c0_16, %c0_17] : memref<128x128xbf16, #tpu.memory_space<vmem>>, vector<128x128xbf16>
    %cst_18 = arith.constant dense<0.000000e+00> : vector<8x128xf32>
    %41 = tpu.matmul %39, %40, %cst_18 {dimension_numbers = #tpu.dot_dimension_numbers<[1], [0], [0], [1], [0, 0, 1, 1], [], []>} : vector<8x128xbf16>, vector<128x128xbf16>, vector<8x128xf32> -> vector<8x128xf32>
    %42 = arith.addf %7, %41 : vector<8x128xf32>
    %c0_19 = arith.constant 0 : index
    %c0_20 = arith.constant 0 : index
    %43 = vector.load %arg9[%c0_19, %c0_20] : memref<1x128xf32, #tpu.memory_space<vmem>>, vector<1x128xf32>
    %44 = vector.broadcast %43 : vector<1x128xf32> to vector<8x128xf32>
    %45 = arith.addf %42, %44 : vector<8x128xf32>
    %c0_21 = arith.constant 0 : index
    %c0_22 = arith.constant 0 : index
    %46 = vector.load %arg10[%c0_21, %c0_22] : memref<1x128xf32, #tpu.memory_space<vmem>>, vector<1x128xf32>
    %c0_23 = arith.constant 0 : index
    %c0_24 = arith.constant 0 : index
    %47 = vector.load %arg11[%c0_23, %c0_24] : memref<1x128xf32, #tpu.memory_space<vmem>>, vector<1x128xf32>
    %cst_25 = arith.constant dense<0.000000e+00> : vector<8xf32>
    %48 = vector.multi_reduction <add>, %45, %cst_25 [1] : vector<8x128xf32> to vector<8xf32>
    %49 = vector.shape_cast %48 : vector<8xf32> to vector<8x1xf32>
    %cst_26 = arith.constant 1.280000e+02 : f32
    %50 = vector.broadcast %cst_26 : f32 to vector<8x1xf32>
    %51 = arith.divf %49, %50 : vector<8x1xf32>
    %52 = vector.broadcast %51 : vector<8x1xf32> to vector<8x128xf32>
    %53 = arith.subf %45, %52 : vector<8x128xf32>
    %54 = arith.mulf %53, %53 : vector<8x128xf32>
    %cst_27 = arith.constant dense<0.000000e+00> : vector<8xf32>
    %55 = vector.multi_reduction <add>, %54, %cst_27 [1] : vector<8x128xf32> to vector<8xf32>
    %56 = vector.shape_cast %55 : vector<8xf32> to vector<8x1xf32>
    %cst_28 = arith.constant 0.00787401571 : f32
    %57 = vector.broadcast %cst_28 : f32 to vector<8x1xf32>
    %58 = arith.mulf %56, %57 : vector<8x1xf32>
    %59 = math.sqrt %58 : vector<8x1xf32>
    %cst_29 = arith.constant 9.99999997E-7 : f32
    %60 = vector.broadcast %cst_29 : f32 to vector<8x1xf32>
    %61 = arith.addf %59, %60 : vector<8x1xf32>
    %62 = tpu.reciprocal %61 : vector<8x1xf32> -> vector<8x1xf32>
    %63 = vector.broadcast %46 : vector<1x128xf32> to vector<8x128xf32>
    %64 = arith.mulf %63, %53 : vector<8x128xf32>
    %65 = vector.broadcast %62 : vector<8x1xf32> to vector<8x128xf32>
    %66 = arith.mulf %64, %65 : vector<8x128xf32>
    %67 = vector.broadcast %47 : vector<1x128xf32> to vector<8x128xf32>
    %68 = arith.addf %66, %67 : vector<8x128xf32>
    %69 = arith.truncf %68 : vector<8x128xf32> to vector<8x128xbf16>
    %c0_30 = arith.constant 0 : index
    %c0_31 = arith.constant 0 : index
    %70 = vector.load %arg12[%c0_30, %c0_31] : memref<128x256xbf16, #tpu.memory_space<vmem>>, vector<128x256xbf16>
    %cst_32 = arith.constant dense<0.000000e+00> : vector<8x256xf32>
    %71 = tpu.matmul %69, %70, %cst_32 {dimension_numbers = #tpu.dot_dimension_numbers<[1], [0], [0], [1], [0, 0, 1, 1], [], []>} : vector<8x128xbf16>, vector<128x256xbf16>, vector<8x256xf32> -> vector<8x256xf32>
    %c0_33 = arith.constant 0 : index
    %c0_34 = arith.constant 0 : index
    %72 = vector.load %arg13[%c0_33, %c0_34] : memref<1x256xf32, #tpu.memory_space<vmem>>, vector<1x256xf32>
    %73 = vector.broadcast %72 : vector<1x256xf32> to vector<8x256xf32>
    %74 = arith.addf %71, %73 : vector<8x256xf32>
    %cst_35 = arith.constant 0.000000e+00 : f32
    %75 = vector.broadcast %cst_35 : f32 to vector<8x256xf32>
    %76 = arith.maximumf %74, %75 : vector<8x256xf32>
    %77 = arith.truncf %76 : vector<8x256xf32> to vector<8x256xbf16>
    %c0_36 = arith.constant 0 : index
    %c0_37 = arith.constant 0 : index
    %78 = vector.load %arg14[%c0_36, %c0_37] : memref<256x128xbf16, #tpu.memory_space<vmem>>, vector<256x128xbf16>
    %cst_38 = arith.constant dense<0.000000e+00> : vector<8x128xf32>
    %79 = tpu.matmul %77, %78, %cst_38 {dimension_numbers = #tpu.dot_dimension_numbers<[1], [0], [0], [1], [0, 0, 1, 1], [], []>} : vector<8x256xbf16>, vector<256x128xbf16>, vector<8x128xf32> -> vector<8x128xf32>
    %c0_39 = arith.constant 0 : index
    %c0_40 = arith.constant 0 : index
    %80 = vector.load %arg15[%c0_39, %c0_40] : memref<1x128xf32, #tpu.memory_space<vmem>>, vector<1x128xf32>
    %81 = vector.broadcast %80 : vector<1x128xf32> to vector<8x128xf32>
    %82 = arith.addf %79, %81 : vector<8x128xf32>
    %83 = arith.addf %45, %82 : vector<8x128xf32>
    %c0_41 = arith.constant 0 : index
    %c0_42 = arith.constant 0 : index
    %c0_43 = arith.constant 0 : index
    %84 = vector.load %arg16[%c0_41, %c0_42, %c0_43] : memref<1x8x128xf32, #tpu.memory_space<vmem>>, vector<1x8x128xf32>
    %85 = vector.shape_cast %84 : vector<1x8x128xf32> to vector<8x128xf32>
    %86 = vector.shape_cast %83 : vector<8x128xf32> to vector<1x8x128xf32>
    tpu.vector_store %arg16[%c0_41, %c0_42, %c0_43], %86 {strides = array<i32>} : memref<1x8x128xf32, #tpu.memory_space<vmem>>, vector<1x8x128xf32>,
    return
  }
  func.func @transform_0(%arg0: i32, %arg1: i32) -> (i32, i32, i32) {
    %c0_i32 = arith.constant 0 : i32
    %c0_i32_0 = arith.constant 0 : i32
    %c0_i32_1 = arith.constant 0 : i32
    return %arg0, %c0_i32, %c0_i32_0 : i32, i32, i32
  }
  func.func @transform_1(%arg0: i32, %arg1: i32) -> (i32, i32, i32) {
    %c0_i32 = arith.constant 0 : i32
    %c0_i32_0 = arith.constant 0 : i32
    return %arg0, %arg1, %c0_i32 : i32, i32, i32
  }
  func.func @transform_2(%arg0: i32, %arg1: i32) -> (i32, i32) {
    %c0_i32 = arith.constant 0 : i32
    %c0_i32_0 = arith.constant 0 : i32
    %c0_i32_1 = arith.constant 0 : i32
    return %c0_i32, %c0_i32_0 : i32, i32
  }
  func.func @transform_3(%arg0: i32, %arg1: i32) -> (i32, i32) {
    %c0_i32 = arith.constant 0 : i32
    %c0_i32_0 = arith.constant 0 : i32
    %c0_i32_1 = arith.constant 0 : i32
    return %c0_i32, %c0_i32_0 : i32, i32
  }
  func.func @transform_4(%arg0: i32, %arg1: i32) -> (i32, i32) {
    %c0_i32 = arith.constant 0 : i32
    %c0_i32_0 = arith.constant 0 : i32
    %c0_i32_1 = arith.constant 0 : i32
    return %c0_i32, %c0_i32_0 : i32, i32
  }
  func.func @transform_5(%arg0: i32, %arg1: i32) -> (i32, i32) {
    %c0_i32 = arith.constant 0 : i32
    %c0_i32_0 = arith.constant 0 : i32
    %c0_i32_1 = arith.constant 0 : i32
    return %c0_i32, %c0_i32_0 : i32, i32
  }
  func.func @transform_6(%arg0: i32, %arg1: i32) -> (i32, i32) {
    %c0_i32 = arith.constant 0 : i32
    %c0_i32_0 = arith.constant 0 : i32
    %c0_i32_1 = arith.constant 0 : i32
    return %c0_i32, %c0_i32_0 : i32, i32
  }
  func.func @transform_7(%arg0: i32, %arg1: i32) -> (i32, i32) {
    %c0_i32 = arith.constant 0 : i32
    %c0_i32_0 = arith.constant 0 : i32
    %c0_i32_1 = arith.constant 0 : i32
    return %c0_i32, %c0_i32_0 : i32, i32
  }
  func.func @transform_8(%arg0: i32, %arg1: i32) -> (i32, i32) {
    %c0_i32 = arith.constant 0 : i32
    %c0_i32_0 = arith.constant 0 : i32
    %c0_i32_1 = arith.constant 0 : i32
    return %c0_i32, %c0_i32_0 : i32, i32
  }
  func.func @transform_9(%arg0: i32, %arg1: i32) -> (i32, i32) {
    %c0_i32 = arith.constant 0 : i32
    %c0_i32_0 = arith.constant 0 : i32
    %c0_i32_1 = arith.constant 0 : i32
    return %c0_i32, %c0_i32_0 : i32, i32
  }
  func.func @transform_10(%arg0: i32, %arg1: i32) -> (i32, i32) {
    %c0_i32 = arith.constant 0 : i32
    %c0_i32_0 = arith.constant 0 : i32
    %c0_i32_1 = arith.constant 0 : i32
    return %c0_i32, %c0_i32_0 : i32, i32
  }
  func.func @transform_11(%arg0: i32, %arg1: i32) -> (i32, i32) {
    %c0_i32 = arith.constant 0 : i32
    %c0_i32_0 = arith.constant 0 : i32
    %c0_i32_1 = arith.constant 0 : i32
    return %c0_i32, %c0_i32_0 : i32, i32
  }
  func.func @transform_12(%arg0: i32, %arg1: i32) -> (i32, i32) {
    %c0_i32 = arith.constant 0 : i32
    %c0_i32_0 = arith.constant 0 : i32
    %c0_i32_1 = arith.constant 0 : i32
    return %c0_i32, %c0_i32_0 : i32, i32
  }
  func.func @transform_13(%arg0: i32, %arg1: i32) -> (i32, i32) {
    %c0_i32 = arith.constant 0 : i32
    %c0_i32_0 = arith.constant 0 : i32
    %c0_i32_1 = arith.constant 0 : i32
    return %c0_i32, %c0_i32_0 : i32, i32
  }
  func.func @transform_14(%arg0: i32, %arg1: i32) -> (i32, i32, i32) {
    %c0_i32 = arith.constant 0 : i32
    %c0_i32_0 = arith.constant 0 : i32
    return %arg0, %arg1, %c0_i32 : i32, i32, i32
  }
}

</mosaic_0001>

<bundles_post_ra>
// kernel: tpu_custom_call.1
= control target key start
LH: loop header
LB: loop body
LE: loop exit
PB: predicated region body
PF: predicated region fallthrough
CT: control target
= control target key end

     0   :  { %s3453_s0 = inlined_call_operand.hbm [shape: f32[2,16,128], index: 0, kind: input, shape index: {}]   ;;  %s3454_s1 = inlined_call_operand.hbm [shape: f32[2,16,16], index: 1, kind: input, shape index: {}]   ;;  %s3455_s2 = inlined_call_operand.hbm [shape: f32[1,128], index: 2, kind: input, shape index: {}]   ;;  %s3456_s3 = inlined_call_operand.hbm [shape: f32[1,128], index: 3, kind: input, shape index: {}]   ;;  %s3457_s4 = inlined_call_operand.hbm [shape: bf16[128,384], index: 4, kind: input, shape index: {}]   ;;  %s3458_s5 = inlined_call_operand.vmem [shape: f32[1,384], index: 5, kind: input, shape index: {}]   ;;  %s3459_s6 = inlined_call_operand.hbm [shape: bf16[128,128], index: 6, kind: input, shape index: {}]   ;;  %s3460_s7 = inlined_call_operand.vmem [shape: f32[1,128], index: 7, kind: input, shape index: {}]   ;;  %s3461_s8 = inlined_call_operand.vmem [shape: f32[1,128], index: 8, kind: input, shape index: {}]   ;;  %s3462_s9 = inlined_call_operand.vmem [shape: f32[1,128], index: 9, kind: input, shape index: {}]   ;;  %s3463_s10 = inlined_call_operand.hbm [shape: bf16[128,256], index: 10, kind: input, shape index: {}]   ;;  %s3464_s11 = inlined_call_operand.vmem [shape: f32[1,256], index: 11, kind: input, shape index: {}]   ;;  %s3465_s12 = inlined_call_operand.hbm [shape: bf16[256,128], index: 12, kind: input, shape index: {}]   ;;  %s3466_s13 = inlined_call_operand.vmem [shape: f32[1,128], index: 13, kind: input, shape index: {}]   ;;  %s3467_s14 = inlined_call_operand.hbm [shape: f32[2,16,128], index: 14, kind: output, shape index: {}]  }
   0x1   :  { %3478 = sst [smem:[#allocation35_spill]] %s3453_s0 }
   0x2   :  { %3479 = sst [smem:[#allocation36_spill]] %s3454_s1 }
   0x3   :  { %3480 = sst [smem:[#allocation37_spill]] %s3455_s2 }
   0x4   :  { %3481 = sst [smem:[#allocation38_spill]] %s3456_s3 }
   0x5   :  { %3482 = sst [smem:[#allocation39_spill]] %s3457_s4 }
   0x6   :  { %3483 = sst [smem:[#allocation40_spill]] %s3458_s5 }
   0x7   :  { %3484 = sst [smem:[#allocation41_spill]] %s3459_s6 }
   0x8   :  { %3485 = sst [smem:[#allocation42_spill]] %s3460_s7 }
   0x9   :  { %3486 = sst [smem:[#allocation43_spill]] %s3461_s8 }
   0xa   :  { %3487 = sst [smem:[#allocation44_spill]] %s3462_s9 }
   0xb   :  { %3488 = sst [smem:[#allocation45_spill]] %s3463_s10 }
   0xc   :  { %3489 = sst [smem:[#allocation46_spill]] %s3464_s11 }
   0xd   :  { %3490 = sst [smem:[#allocation47_spill]] %s3465_s12 }
   0xe   :  { %3491 = sst [smem:[#allocation48_spill]] %s3466_s13 }
   0xf   :  { %3492 = sst [smem:[#allocation49_spill]] %s3467_s14 }
  0x10   :  { %19 = vsyncpa [#allocation6], 0 }
  0x11   :  { %21 = vsyncpa [#allocation6 + $0x1], 0 }
  0x12   :  { %22 = vsyncpa [#allocation9], 0 }
  0x13   :  { %24 = vsyncpa [#allocation9 + $0x1], 0 }
  0x14   :  { %25 = vsyncpa [#allocation12], 0 }
  0x15   :  { %26 = vsyncpa [#allocation15], 0 }
  0x16   :  { %27 = vsyncpa [#allocation18], 0 }
  0x17   :  { %28 = vsyncpa [#allocation7], 0 }
  0x18   :  { %30 = vsyncpa [#allocation7 + $0x1], 0  ;;  %s3049_s29 = smov 0   ;;  %s3051_s30 = smov 0  }
  0x19   :  { %s3053_s15 = smov 0   ;;  %s3055_s16 = smov 0  }
  0x1a   :  { %s3057_s17 = smov 0   ;;  %s3059_s18 = smov 0  }
  0x1b   :  { %s3061_s19 = smov 0   ;;  %s3063_s20 = smov 0  }
  0x1c   :  { %s3065_s21 = smov 0   ;;  %s3067_s22 = smov 0  }
  0x1d   :  { %s3069_s23 = smov 0  }
  0x1e LB: > { %3493 = sst [smem:[#allocation27_spill]] %s2912_s29  ;;  %s3105_s24 = sadd.s32 4294967295, %s2952_s23   ;;  %s2952_s23 = sphi %s3069_s23, %s36_s23   ;;  %s2948_s22 = sphi %s3067_s22, %s3549_s22   ;;  %s2944_s21 = sphi %s3065_s21, %s3548_s21   ;;  %s2940_s20 = sphi %s3063_s20, %s3547_s20   ;;  %s2936_s19 = sphi %s3061_s19, %s3546_s19   ;;  %s2932_s18 = sphi %s3059_s18, %s3545_s18   ;;  %s2928_s17 = sphi %s3057_s17, %s3544_s17   ;;  %s2924_s16 = sphi %s3055_s16, %s3543_s16   ;;  %s2920_s15 = sphi %s3053_s15, %s3542_s15   ;;  %s2916_s30 = sphi %s3051_s30, %s3541_s30   ;;  %s2912_s29 = sphi %s3049_s29, %s3540_s29  }
  0x1f   : > { %3494 = sst [smem:[#allocation28_spill]] %s2936_s19  ;;  %p1949_p0 = scmp.ge.s32.totalorder %s2952_s23, 1 }
  0x20   : > { %3495 = sst [smem:[#allocation29_spill]] %s2940_s20  ;;  %p3471_p1 = scmp.eq.s32.totalorder %s3105_s24, 0 }
  0x21   : > { %p387_p2 = scmp.lt.s32.totalorder %s2952_s23, 5  ;;  %s3496_s2 = sld [smem:[#allocation37_spill]] }
  0x22   : > { %s2954_s14 = smov [#allocation10]   ;;  %s3499_s3 = sld [smem:[#allocation38_spill]] }
  0x23   : > { %p3113_p3 = pnand %p1949_p0, %p387_p2  ;;  %s401_s13 = sshll.u32 %s2954_s14, 4  ;;  %s402_s13 = int_to_ptr.vmem [resolvable:$true] %s401_s13 }
  0x24   : > { %s3501_s6 = sld [smem:[#allocation41_spill]]  ;;  %s2955_s7 = smov [#allocation11]  }
  0x25   : > { %s3497_s28 = scalar_select %p3113_p3, 1, 0 }
  0x26   : > { %p2380_p4 = pneg %p3113_p3  ;;  %s413_s14 = sshll.u32 %s2955_s7, 4  ;;  %s414_s14 = int_to_ptr.vmem [resolvable:$true] %s413_s14 }
  0x27   : > { %s399_s27 = sshll.u32 %s3496_s2, 4  ;;  %3498 = sst [smem:[#allocation30_spill]] %s3497_s28  ;;  %s400_s27 = int_to_ptr.hbm [resolvable:$true] %s399_s27 }
  0x28   : > { %s411_s9 = sshll.u32 %s3499_s3, 4  ;;  %p3124_p5 = pnand %p2380_p4, %p3471_p1  ;;  %s412_s9 = int_to_ptr.hbm [resolvable:$true] %s411_s9 }
  0x29   : > { %s2956_s11 = smov [#allocation14]   ;;  %s3502_s4 = sld [smem:[#allocation39_spill]] }
  0x2a   : > { %s439_s2 = sshll.u32 %s3501_s6, 4  ;;  %s441_s20 = sshll.u32 %s2956_s11, 4  ;;  %s440_s2 = int_to_ptr.hbm [resolvable:$true] %s439_s2  ;;  %s442_s20 = int_to_ptr.vmem [resolvable:$true] %s441_s20 }
  0x2b   : > { %2383 = dma.hbm_to_vmem [thread:$0]  (!%p3124_p5), %s400_s27, 16, %s402_s13, [#allocation9]  }
  0x2c   : > { %2386 = dma.hbm_to_vmem [thread:$0]  (!%p3124_p5), %s412_s9, 16, %s414_s14, [#allocation12]  }
  0x2d   : > { %s2957_s28 = smov 64   ;;  %s2958_s1 = smov 4  }
  0x2e   : > { %2392 = dma.hbm_to_vmem [thread:$0]  (!%p3124_p5), %s440_s2, 1024, %s442_s20, [#allocation15], %s2957_s28, %s2957_s28, %s2958_s1  }
  0x2f   : > { %s422_s19 = sshll.u32 %s3502_s4, 4  ;;  %s2959_s7 = smov [#allocation13]   ;;  %s423_s19 = int_to_ptr.hbm [resolvable:$true] %s422_s19 }
  0x30   : > { %s424_s13 = sshll.u32 %s2959_s7, 4  ;;  %s2960_s27 = smov 192   ;;  %s425_s13 = int_to_ptr.vmem [resolvable:$true] %s424_s13 }
  0x31   : > { %s2961_s25 = smov 12   ;;  %s3503_s10 = sld [smem:[#allocation45_spill]] }
  0x32   : > { %2389 = dma.hbm_to_vmem [thread:$0]  (!%p3124_p5), %s423_s19, 3072, %s425_s13, [#allocation12], %s2960_s27, %s2960_s27, %s2961_s25  }
  0x33   : > { %s2962_s2 = smov [#allocation16]   ;;  %s3504_s12 = sld [smem:[#allocation47_spill]] }
  0x34   : > { %s464_s5 = sshll.u32 %s2962_s2, 4  ;;  %s2963_s20 = smov 128   ;;  %s465_s5 = int_to_ptr.vmem [resolvable:$true] %s464_s5 }
  0x35   : > { %s2964_s7 = smov 8   ;;  %s2965_s13 = smov [#allocation17]  }
  0x36   : > { %s481_s27 = sshll.u32 %s2965_s13, 4  ;;  %s55_s25 = sadd.s32 1, %s2932_s18  ;;  %s482_s27 = int_to_ptr.vmem [resolvable:$true] %s481_s27 }
  0x37   : > { %s462_s3 = sshll.u32 %s3503_s10, 4  ;;  %p62_p6 = scmp.ne.s32.totalorder %s2932_s18, %s2928_s17  ;;  %s463_s3 = int_to_ptr.hbm [resolvable:$true] %s462_s3 }
  0x38   : > { %2395 = dma.hbm_to_vmem [thread:$0]  (!%p3124_p5), %s463_s3, 2048, %s465_s5, [#allocation15], %s2963_s20, %s2963_s20, %s2964_s7  }
  0x39   : > { %s479_s19 = sshll.u32 %s3504_s12, 4  ;;  %p63_p7 = scmp.eq.s32.totalorder %s2952_s23, 0  ;;  %s480_s19 = int_to_ptr.hbm [resolvable:$true] %s479_s19 }
  0x3a   : > { %2398 = dma.hbm_to_vmem [thread:$0]  (!%p3124_p5), %s480_s19, 2048, %s482_s27, [#allocation18], %s2957_s28, %s2957_s28, %s2958_s1  }
  0x3b   : > { %p68_p8 = scmp.ne.s32.totalorder %s2928_s17, %s2924_s16  ;;  %p2416_p9 = scmp.lt.s32.totalorder %s2952_s23, 4 }
  0x3c   : > { %s498_s9 = sand.u32 1, %s2932_s18   ;;  %p64_p10 = por %p63_p7, %p62_p6 }
  0x3d   : > { %p3167_p11 = por %p3471_p1, %p68_p8  ;;  %s1957_s8 = sshll.u32 %s498_s9, 4 }
  0x3e   : > { %s2277_s1 = sshll.u32 %s2948_s22, 4  ;;  %s3506_s0 = sld [smem:[#allocation35_spill]] }
  0x3f   : > { %s502_s2 = scalar_lea.vmem [#allocation5], %s1957_s8  ;;  %p2400_p12 = pnand %p2416_p9, %p64_p10 }
  0x40   : > { %s510_s5 = sshll.u32 %s502_s2, 4  ;;  %s499_s11 = scalar_lea.sflag [#allocation6], %s498_s9  ;;  %s511_s5 = int_to_ptr.vmem [resolvable:$true] %s510_s5 }
  0x41   : > { %s1948_s19 = sadd.s32 4294967294, %s2952_s23   ;;  %s45_s13 = sadd.s32 1, %s2944_s21 }
  0x42   : > { %s48_s27 = sadd.s32 1, %s2948_s22  ;;  %p46_p13 = scmp.ge.s32.totalorder %s45_s13, 2 }
  0x43   : > { %s83_s8 = sadd.s32 1, %s2920_s15  ;;  %p90_p0 = scmp.ne.s32.totalorder %s2920_s15, %s2916_s30 }
  0x44   : > { %s507_s16 = scalar_lea.hbm %s3506_s0, %s2277_s1  ;;  %p96_p2 = scmp.ne.s32.totalorder %s2916_s30, %s2912_s29 }
  0x45   : > { %s508_s14 = sshll.u32 %s507_s16, 4  ;;  %s3551_s13 = smov (%p46_p13, %s45_s13), 0  ;;  %s509_s14 = int_to_ptr.hbm [resolvable:$true] %s508_s14 }
  0x46   : > { %2402 = dma.hbm_to_vmem [thread:$0]  (!%p2400_p12), %s509_s14, 256, %s511_s5, %s499_s11, %s2963_s20, %s2963_s20, %s2964_s7  }
  0x47   : > { %3507 = sst [smem:[#allocation31_spill]] %s3551_s13  ;;  %s3553_s27 = smov (!%p46_p13, %s48_s27), %s2948_s22 }
  0x48   : > { %s79_s9 = ssub.s32 %s2944_s21, %s3551_s13  ;;  %p3195_p4 = por %p90_p0, %p63_p7 }
  0x49   : > { %p50_p5 = scmp.ge.s32.totalorder %s3553_s27, 2  ;;  %p3201_p6 = por %p96_p2, %p3471_p1 }
  0x4a   : > { %p374_p8 = scmp.eq.s32.totalorder %s3105_s24, 3  ;;  %p380_p10 = scmp.eq.s32.totalorder %s1948_s19, 3 }
  0x4b   : > { %s3555_s27 = smov (%p50_p5, %s3553_s27), 0  ;;  %s520_s16 = sand.u32 1, %s2952_s23  }
  0x4c   : > { %3510 = sst [smem:[#allocation32_spill]] %s3555_s27  ;;  %p3208_p12 = por %p374_p8, %p90_p0 }
  0x4d   : > { %p3212_p7 = por %p380_p10, %p96_p2  ;;  %s52_s3 = ssub.s32 %s2948_s22, %s3555_s27 }
  0x4e   : > { %s3511_s1 = scalar_select %p3208_p12, 1, 0 }
  0x4f   : > { %s3513_s28 = scalar_select %p3212_p7, 1, 0 }
  0x50   : > { %3512 = sst [smem:[#allocation33_spill]] %s3511_s1  ;;  %p53_p13 = scmp.eq.s32.totalorder %s52_s3, 0 }
  0x51   : > { %3514 = sst [smem:[#allocation34_spill]] %s3513_s28  ;;  %s80_s2 = sor.u32 %s79_s9, %s52_s3 }
  0x52   : > { %p81_p1 = scmp.eq.s32.totalorder %s80_s2, 0  ;;  %s522_s11 = sand.u32 1, %s2920_s15  }
  0x53   : > { %s3222_s5 = scalar_select %p53_p13, %s2932_s18, %s55_s25  }
  0x54   : > { %s3225_s14 = scalar_select %p81_p1, %s2920_s15, %s83_s8  }
  0x55   : > { %s1961_s19 = sshll.u32 %s2948_s22, 1  ;;  %s1960_s0 = sshll.u32 %s522_s11, 3 }
  0x56   : > { %s528_s4 = sadd.s32 %s2944_s21, %s1961_s19  ;;  %s3515_s13 = sld [smem:[#allocation36_spill]] }
  0x57   : > { %s1962_s6 = sshll.u32 %s528_s4, 3  ;;  %s524_s28 = scalar_lea.vmem [#allocation8], %s1960_s0 }
  0x58   : > { %s534_s29 = sshll.u32 %s524_s28, 4  ;;  %p2403_p0 = pnand %p2416_p9, %p3195_p4  ;;  %s535_s29 = int_to_ptr.vmem [resolvable:$true] %s534_s29 }
  0x59   : > { %s521_s25 = scalar_lea.sflag [#allocation9], %s520_s16  ;;  %s545_s4 = sand.u32 (!%p3113_p3), 1, %s2928_s17  }
  0x5a   : > { %543 = sbr.rel (%p3113_p3) target bundleno = 2055 (0x807), region = 76  ;;  %s1964_s9 = sshll.u32 (!%p3113_p3), %s545_s4, 4 }
  0x5b   : > { %s546_s3 = scalar_lea.sflag (!%p3113_p3), [#allocation6], %s545_s4  ;;  %s3240_s10 = scalar_lea.vmem (!%p3113_p3), [#allocation5], %s1964_s9 }
  0x5c   : > { %s530_s27 = scalar_lea.hbm %s3515_s13, %s1962_s6 }
  0x5d   : > { %s532_s1 = sshll.u32 %s530_s27, 4  ;;  %s533_s1 = int_to_ptr.hbm [resolvable:$true] %s532_s1 }
  0x5e   : > { %2405 = dma.hbm_to_vmem [thread:$0]  (!%p2403_p0), %s533_s1, 128, %s535_s29, %s521_s25  }
  0x5f   : > { %2883 = dma.done.wait (%p3167_p11), %s546_s3, 256  }
  0x60   : > { %2885 = vsyncadd (%p3167_p11), %s546_s3, 4294967040  ;;  %s555_s0 = sand.u32 1, %s3105_s24   ;;  %s557_s6 = sand.u32 1, %s2916_s30  }
  0x61   : > { %s3250_s12 = sshll.u32 %s557_s6, 3  ;;  %s556_s29 = scalar_lea.sflag [#allocation9], %s555_s0 }
  0x62   : > { %s559_s13 = scalar_lea.vmem [#allocation8], %s3250_s12 }
  0x63   : > { %2887 = dma.done.wait (%p3201_p6), %s556_s29, 128  }
  0x64   : > { %2889 = vsyncadd (%p3201_p6), %s556_s29, 4294967168  ;;  %p3517_p1 = scmp.eq.s32.totalorder %s3105_s24, 0 }
  0x66   : > { %2891 = dma.done.wait (%p3517_p1), [#allocation9], 16   ;;  %p3518_p3 = pmov %p3517_p1 }
  0x67   : > { %p3519_p9 = pmov %p3517_p1 }
  0x68   : > { %2893 = vsyncadd (%p3518_p3), [#allocation9], 4294967280 }
  0x69   : > { %2895 = dma.done.wait (%p3519_p9), [#allocation12], 3088   ;;  %p3520_p11 = pmov %p3517_p1 }
  0x6a   : > { %p3521_p2 = pmov %p3517_p1 }
  0x6b   : > { %2897 = vsyncadd (%p3520_p11), [#allocation12], 4294964208 }
  0x6c   : > { %2899 = dma.done.wait (%p3521_p2), [#allocation15], 3072   ;;  %p3522_p4 = pmov %p3517_p1 }
  0x6d   : > { %p3523_p5 = pmov %p3517_p1 }
  0x6e   : > { %2901 = vsyncadd (%p3522_p4), [#allocation15], 4294964224 }
  0x6f   : > { %2903 = dma.done.wait (%p3523_p5), [#allocation18], 2048   ;;  %p3524_p6 = pmov %p3517_p1 }
  0x70   : > { %s639_s26 = scalar_lea.vmem [#allocation19], %s3250_s12  ;;  %s3525_s27 = sld [smem:[#allocation28_spill]] }
  0x71   : > { %2905 = vsyncadd (%p3524_p6), [#allocation18], 4294965248 }
  0x76   : > { %p1973_p8 = scmp.ne.s32.totalorder %s3525_s27, 0 }
  0x77   : > { %s3526_s7 = sld [smem:[#allocation40_spill]] (!%p1973_p8)  ;;  %s2967_s1 = smov (!%p1973_p8), 64  }
  0x78   : > { %644 = sbr.rel (%p1973_p8) target bundleno = 706 (0x2c2), region = 112  ;;  %s2968_s28 = smov (!%p1973_p8), 96  }
  0x79   : > { %s2969_s16 = smov (!%p1973_p8), 32  }
  0x7d   : > { %v645_v0 = vld [vmem:[%s3240_s10] sm:$0xff]  ;;  %v646_v1 = vld [vmem:[%s3240_s10 + $0x8] sm:$0xff]  ;;  %v2966_v2 = vmov 128.0   ;;  %vm953_vm13 = vcmask 257024  }
  0x7e   : > { %649 = vadd.xlane.f32.xlu0 %v645_v0  ;;  %2534 = vrcp.f32 %v2966_v2  ;;  %v2060_v17 = vld [vmem:[#allocation13 + $0xa8] sm:$0xf]  ;;  %v2300_v18 = vld [vmem:[#allocation13 + $0xb0] sm:$0xf0]  ;;  %v2299_v19 = vld [vmem:[#allocation13 + $0xac] sm:$0xf] }
  0x7f   : > { %v2061_v20 = vor.u32 %v2300_v18, %v2060_v17  ;;  %v2062_v21 = vld [vmem:[#allocation13 + $0xb4] sm:$0xf0]  ;;  %v2068_v22 = vld [vmem:[#allocation13 + $0xb0] sm:$0xf]  ;;  %v2301_v23 = vld [vmem:[#allocation13 + $0xb8] sm:$0xf0] }
  0x80   : > { %v2065_v24 = vor.u32 %v2299_v19, %v2062_v21  ;;  %v2069_v25 = vor.u32 %v2301_v23, %v2068_v22  ;;  %v2048_v26 = vld [vmem:[#allocation13 + $0x90] sm:$0xf]  ;;  %v2297_v27 = vld [vmem:[#allocation13 + $0x98] sm:$0xf0]  ;;  %v2296_v28 = vld [vmem:[#allocation13 + $0x94] sm:$0xf] }
  0x81   : > { %907 = vmatpush.bf16.msra.mxu0 %v2061_v20  ;;  %v2049_v29 = vor.u32 %v2297_v27, %v2048_v26  ;;  %v2050_v30 = vld [vmem:[#allocation13 + $0x9c] sm:$0xf0]  ;;  %v2056_v31 = vld [vmem:[#allocation13 + $0x98] sm:$0xf]  ;;  %v2298_v32 = vld [vmem:[#allocation13 + $0xa0] sm:$0xf0] }
  0x82   : > { %921 = vmatpush.bf16.msra.mxu1 %v2065_v24  ;;  %935 = vmatpush.bf16.msra.mxu2 %v2069_v25  ;;  %v2053_v33 = vor.u32 %v2296_v28, %v2050_v30  ;;  %v2057_v34 = vor.u32 %v2298_v32, %v2056_v31  ;;  %v2036_v35 = vld [vmem:[#allocation13 + $0x78] sm:$0xf]  ;;  %v2294_v36 = vld [vmem:[#allocation13 + $0x80] sm:$0xf0]  ;;  %v2293_v37 = vld [vmem:[#allocation13 + $0x7c] sm:$0xf] }
  0x83   : > { %v2037_v38 = vor.u32 %v2294_v36, %v2036_v35  ;;  %v2038_v39 = vld [vmem:[#allocation13 + $0x84] sm:$0xf0]  ;;  %v2044_v40 = vld [vmem:[#allocation13 + $0x80] sm:$0xf]  ;;  %v2295_v41 = vld [vmem:[#allocation13 + $0x88] sm:$0xf0] }
  0x84   : > { %v2535_v3 = vpop.eup %2534  ;;  %v2041_v43 = vor.u32 %v2293_v37, %v2038_v39  ;;  %v2045_v44 = vor.u32 %v2295_v41, %v2044_v40  ;;  %v2024_v45 = vld [vmem:[#allocation13 + $0x60] sm:$0xf]  ;;  %v2291_v46 = vld [vmem:[#allocation13 + $0x68] sm:$0xf0]  ;;  %v2290_v47 = vld [vmem:[#allocation13 + $0x64] sm:$0xf] }
  0x85   : > { %v654_v4 = vmul.f32 128.0, %v2535_v3  ;;  %vm658_vm0 = vweird.f32 %v2535_v3  ;;  %908 = vmatpush.bf16.msra.mxu0 %v2049_v29  ;;  %v2026_v49 = vld [vmem:[#allocation13 + $0x6c] sm:$0xf0]  ;;  %v2032_v50 = vld [vmem:[#allocation13 + $0x68] sm:$0xf]  ;;  %v2025_v51 = vor.u32 %v2291_v46, %v2024_v45 }
  0x86   : > { %651 = vadd.xlane.f32.xlu0 %v646_v1  ;;  %922 = vmatpush.bf16.msra.mxu1 %v2053_v33  ;;  %v2292_v52 = vld [vmem:[#allocation13 + $0x70] sm:$0xf0]  ;;  %v2029_v53 = vor.u32 %v2290_v47, %v2026_v49  ;;  %v2012_v54 = vld [vmem:[#allocation13 + $0x48] sm:$0xf]  ;;  %v2287_v56 = vld [vmem:[#allocation13 + $0x4c] sm:$0xf] }
  0x87   : > { %v655_v5 = vsub.f32 1.0, %v654_v4  ;;  %936 = vmatpush.bf16.msra.mxu2 %v2057_v34  ;;  %v2288_v55 = vld [vmem:[#allocation13 + $0x50] sm:$0xf0]  ;;  %v2033_v57 = vor.u32 %v2292_v52, %v2032_v50  ;;  %v2014_v58 = vld [vmem:[#allocation13 + $0x54] sm:$0xf0] }
  0x88   : > { %v2020_v59 = vld [vmem:[#allocation13 + $0x50] sm:$0xf]  ;;  %v2289_v60 = vld [vmem:[#allocation13 + $0x58] sm:$0xf0]  ;;  %v2013_v61 = vor.u32 %v2288_v55, %v2012_v54  ;;  %v2017_v62 = vor.u32 %v2287_v56, %v2014_v58  ;;  %v2284_v2 = vld [vmem:[#allocation13 + $0x34] sm:$0xf] }
  0x89   : > { %v656_v6 = vmul.f32 %v2535_v3, %v655_v5  ;;  %909 = vmatpush.bf16.msra.mxu0 %v2037_v38  ;;  %v2021_v63 = vor.u32 %v2289_v60, %v2020_v59  ;;  %v2002_v4 = vld [vmem:[#allocation13 + $0x3c] sm:$0xf0]  ;;  %v2008_v5 = vld [vmem:[#allocation13 + $0x38] sm:$0xf]  ;;  %v2281_v17 = vld [vmem:[#allocation13 + $0x1c] sm:$0xf] }
  0x8a   : > { %923 = vmatpush.bf16.msra.mxu1 %v2041_v43  ;;  %v1990_v19 = vld [vmem:[#allocation13 + $0x24] sm:$0xf0]  ;;  %v1996_v20 = vld [vmem:[#allocation13 + $0x20] sm:$0xf]  ;;  %v2283_v21 = vld [vmem:[#allocation13 + $0x28] sm:$0xf0] }
  0x8b   : > { %v657_v7 = vadd.f32 %v2535_v3, %v656_v6  ;;  %937 = vmatpush.bf16.msra.mxu2 %v2045_v44  ;;  %v2286_v6 = vld [vmem:[#allocation13 + $0x40] sm:$0xf0]  ;;  %v1976_v24 = vld [vmem:[#allocation13] sm:$0xf]  ;;  %v1993_v25 = vor.u32 %v2281_v17, %v1990_v19  ;;  %v1997_v26 = vor.u32 %v2283_v21, %v1996_v20  ;;  %v2279_v27 = vld [vmem:[#allocation13 + $0x8] sm:$0xf0] }
  0x8c   : > { %v2278_v28 = vld [vmem:[#allocation13 + $0x4] sm:$0xf]  ;;  %v1978_v29 = vld [vmem:[#allocation13 + $0xc] sm:$0xf0]  ;;  %v1984_v31 = vld [vmem:[#allocation13 + $0x8] sm:$0xf]  ;;  %v1977_v36 = vor.u32 %v2279_v27, %v1976_v24 }
  0x8d   : > { %v659_v8 = vsel %vm658_vm0, %v2535_v3, %v657_v7  ;;  %910 = vmatpush.bf16.msra.mxu0 %v2025_v51  ;;  %v2280_v32 = vld [vmem:[#allocation13 + $0x10] sm:$0xf0]  ;;  %v1981_v37 = vor.u32 %v2278_v28, %v1978_v29 }
  0x8e   : > { %924 = vmatpush.bf16.msra.mxu1 %v2029_v53  ;;  %v1985_v38 = vor.u32 %v2280_v32, %v1984_v31 }
  0x8f   : > { %938 = vmatpush.bf16.msra.mxu2 %v2033_v57 }
  0x91   : > { %911 = vmatpush.bf16.msra.mxu0 %v2013_v61 }
  0x92   : > { %925 = vmatpush.bf16.msra.mxu1 %v2017_v62  ;;  %v2532_v62 = vld [vmem:[#allocation10] ss:$0 sm:$0xff] }
  0x93   : > { %939 = vmatpush.bf16.msra.mxu2 %v2021_v63 }
  0xf1   : > { %v650_v9 = vpop.xlane.xlu0 %649 }
  0xf2   : > { %v660_v10 = vmul.f32 %v659_v8, %v650_v9 }
  0xf4   : > { %v3277_v11 = vsub.f32 %v645_v0, %v660_v10  ;;  %v2000_v0 = vld [vmem:[#allocation13 + $0x30] sm:$0xf] }
  0xf6   : > { %v664_v12 = vmul.f32 %v3277_v11, %v3277_v11 }
  0xf8   : > { %666 = vadd.xlane.f32.xlu1 %v664_v12  ;;  %v2005_v12 = vor.u32 %v2284_v2, %v2002_v4 }
  0xf9   : > { %v652_v13 = vpop.xlane.xlu0 %651 }
  0xfa   : > { %v661_v14 = vmul.f32 %v659_v8, %v652_v13  ;;  %v2009_v13 = vor.u32 %v2286_v6, %v2008_v5  ;;  %926 = vmatpush.bf16.msra.mxu1 %v2005_v12  ;;  %v729_v6 = vmul.f32 %v2532_v62, %v3277_v11  ;;  %v771_v11 = vld [vmem:[%s3526_s7] sm:$0x7] }
  0xfb   : > { %v773_v20 = vperm.slane %v771_v11, 0  ;;  %v774_v21 = vperm.slane %v771_v11, 1  ;;  %v775_v27 = vperm.slane %v771_v11, 2 }
  0xfc   : > { %v3281_v15 = vsub.f32 %v646_v1, %v661_v14  ;;  %v2285_v1 = vld [vmem:[#allocation13 + $0x38] sm:$0xf0]  ;;  %v1988_v14 = vld [vmem:[#allocation13 + $0x18] sm:$0xf]  ;;  %940 = vmatpush.bf16.msra.mxu2 %v2009_v13 }
  0xfd   : > { %v2001_v10 = vor.u32 %v2285_v1, %v2000_v0  ;;  %v2533_v13 = vld [vmem:[#allocation11] ss:$0 sm:$0xff] }
  0xfe   : > { %v665_v16 = vmul.f32 %v3281_v15, %v3281_v15  ;;  %927 = vmatpush.bf16.msra.mxu1 %v1993_v25 }
  0xff   : > { %912 = vmatpush.bf16.msra.mxu0 %v2001_v10 }
 0x100   : > { %668 = vadd.xlane.f32.xlu1 %v665_v16  ;;  %v2282_v16 = vld [vmem:[#allocation13 + $0x20] sm:$0xf0]  ;;  %941 = vmatpush.bf16.msra.mxu2 %v1997_v26 }
 0x101   : > { %v1989_v23 = vor.u32 %v2282_v16, %v1988_v14 }
 0x102   : > { %928 = vmatpush.bf16.msra.mxu1 %v1981_v37 }
 0x103   : > { %913 = vmatpush.bf16.msra.mxu0 %v1989_v23 }
 0x104   : > { %942 = vmatpush.bf16.msra.mxu2 %v1985_v38 }
 0x107   : > { %914 = vmatpush.bf16.msra.mxu0 %v1977_v36 }
 0x16b   : > { %v667_v42 = vpop.xlane.xlu1 %666 }
 0x16c   : > { %v3285_v48 = vmul.f32 0.007874016, %v667_v42 }
 0x16e   : > { %2536 = vrsqrt.f32 %v3285_v48  ;;  %vm679_vm1 = vcmp.eq.f32.partialorder %v3285_v48, inf  ;;  %v682_v41 = vand.u32 2147483648, %v3285_v48  ;;  %vm681_vm2 = vcmp.eq.f32.partialorder %v3285_v48, 0.0 }
 0x173   : > { %v669_v3 = vpop.xlane.xlu1 %668 }
 0x174   : > { %v2537_v7 = vpop.eup %2536  ;;  %v671_v8 = vmul.f32 0.007874016, %v669_v3 }
 0x175   : > { %v673_v9 = vmul.f32 %v2537_v7, %v3285_v48 }
 0x176   : > { %2538 = vrsqrt.f32 %v671_v8  ;;  %vm691_vm3 = vcmp.eq.f32.partialorder %v671_v8, inf  ;;  %v694_v50 = vand.u32 2147483648, %v671_v8  ;;  %vm693_vm4 = vcmp.eq.f32.partialorder %v671_v8, 0.0 }
 0x177   : > { %v674_v18 = vmul.f32 %v2537_v7, %v673_v9  ;;  %v730_v9 = vmul.f32 %v2532_v62, %v3281_v15 }
 0x179   : > { %v675_v22 = vmul.f32 0.5, %v674_v18 }
 0x17b   : > { %v676_v30 = vsub.f32 1.5, %v675_v22 }
 0x17c   : > { %v2539_v33 = vpop.eup %2538 }
 0x17d   : > { %v677_v34 = vmul.f32 %v2537_v7, %v676_v30  ;;  %v685_v35 = vmul.f32 %v2539_v33, %v671_v8 }
 0x17f   : > { %v678_v39 = vmul.f32 %v677_v34, %v3285_v48  ;;  %v686_v40 = vmul.f32 %v2539_v33, %v685_v35 }
 0x181   : > { %v680_v42 = vsel %vm679_vm1, %v3285_v48, %v678_v39  ;;  %v687_v43 = vmul.f32 0.5, %v686_v40 }
 0x182   : > { %v683_v44 = vsel %vm681_vm2, %v682_v41, %v680_v42 }
 0x183   : > { %v688_v45 = vsub.f32 1.5, %v687_v43  ;;  %v696_v46 = vadd.f32 1e-06, %v683_v44 }
 0x185   : > { %v689_v47 = vmul.f32 %v2539_v33, %v688_v45  ;;  %2540 = vrcp.f32 %v696_v46  ;;  %v709_v59 = vand.u32 2147483648, %v696_v46  ;;  %vm703_vm6 = vweird.f32 %v696_v46 }
 0x186   : > { %v707_v60 = vand.u32 2147483647, %v696_v46 }
 0x187   : > { %v690_v49 = vmul.f32 %v689_v47, %v671_v8  ;;  %v710_v1 = vor.u32 1.1754944e-38, %v709_v59 }
 0x188   : > { %vm708_vm8 = vcmp.eq.f32.partialorder %v707_v60, 8.507059e+37 }
 0x189   : > { %v692_v51 = vsel %vm691_vm3, %v671_v8, %v690_v49 }
 0x18a   : > { %v695_v52 = vsel %vm693_vm4, %v694_v50, %v692_v51 }
 0x18b   : > { %v2541_v53 = vpop.eup %2540  ;;  %v697_v54 = vadd.f32 1e-06, %v695_v52 }
 0x18c   : > { %v699_v55 = vmul.f32 %v2541_v53, %v696_v46  ;;  %vm704_vm5 = vweird.f32 %v2541_v53 }
 0x18d   : > { %2542 = vrcp.f32 %v697_v54  ;;  %vm705_vm7 = vmor %vm703_vm6, %vm704_vm5  ;;  %v723_v2 = vand.u32 2147483648, %v697_v54  ;;  %v721_v4 = vand.u32 2147483647, %v697_v54  ;;  %vm717_vm10 = vweird.f32 %v697_v54 }
 0x18e   : > { %v700_v48 = vsub.f32 1.0, %v699_v55 }
 0x18f   : > { %v724_v8 = vor.u32 1.1754944e-38, %v723_v2  ;;  %vm722_vm12 = vcmp.eq.f32.partialorder %v721_v4, 8.507059e+37 }
 0x190   : > { %v701_v56 = vmul.f32 %v2541_v53, %v700_v48 }
 0x192   : > { %v702_v57 = vadd.f32 %v2541_v53, %v701_v56 }
 0x193   : > { %v2543_v58 = vpop.eup %2542 }
 0x194   : > { %v713_v61 = vmul.f32 %v2543_v58, %v697_v54  ;;  %v706_v63 = vsel %vm705_vm7, %v2541_v53, %v702_v57  ;;  %vm718_vm9 = vweird.f32 %v2543_v58 }
 0x195   : > { %v711_v5 = vsel %vm708_vm8, %v710_v1, %v706_v63  ;;  %vm719_vm11 = vmor %vm717_vm10, %vm718_vm9 }
 0x196   : > { %v714_v0 = vsub.f32 1.0, %v713_v61  ;;  %v731_v12 = vmul.f32 %v729_v6, %v711_v5 }
 0x198   : > { %v715_v3 = vmul.f32 %v2543_v58, %v714_v0  ;;  %v736_v17 = vadd.f32 %v2533_v13, %v731_v12 }
 0x19a   : > { %v716_v7 = vadd.f32 %v2543_v58, %v715_v3 }
 0x19c   : > { %v720_v10 = vsel %vm719_vm11, %v2543_v58, %v716_v7 }
 0x19d   : > { %v725_v14 = vsel %vm722_vm12, %v724_v8, %v720_v10 }
 0x19e   : > { %v732_v16 = vmul.f32 %v730_v9, %v725_v14 }
 0x1a0   : > { %v737_v18 = vadd.f32 %v2533_v13, %v732_v16 }
 0x1a2   : > { %v738_v19 = vpack.c.bf16 %v737_v18, %v736_v17 }
 0x1a4   : > { %915 = vmatmul.bf16.vlgmr.msra.gmra.mxu0 %v738_v19  ;;  %929 = vmatmul.bf16.vlgmr.msra.gmra.mxu1 %v738_v19 }
 0x1a5   : > { %943 = vmatmul.bf16.vlgmr.msra.gmra.mxu2 %v738_v19 }
 0x221   : > { %v916_v22 = vpop.f32.mrf.mxu0  ;;  %v930_v15 = vpop.f32.mrf.mxu1 }
 0x222   : > { %v917_v23 = vadd.f32 %v916_v22, %v773_v20  ;;  %v931_v24 = vadd.f32 %v930_v15, %v774_v21 }
 0x224   : > { %v949_v25 = vmul.f32 0.17677669, %v917_v23  ;;  %v956_v26 = vpack.c.bf16 %v931_v24, %v931_v24 }
 0x226   : > { %v951_v28 = vpack.c.bf16 %v949_v25, %v949_v25  ;;  %958 = vst.msk [vmem:[#allocation3] sm:$0xf] %vm953_vm13, %v956_v26  ;;  %1006 = vrot.lane.b32.xlu2 %v956_v26, %s2967_s1  ;;  %977 = vrot.lane.b32.xlu0 %v956_v26, %s2968_s28 }
 0x228   : > { %954 = vst.msk [vmem:[#allocation2] sm:$0xf] %vm953_vm13, %v951_v28  ;;  %v944_v29 = vpop.f32.mrf.mxu2  ;;  %1024 = vrot.lane.b32.xlu1 %v951_v28, %s2969_s16 }
 0x229   : > { %v945_v30 = vadd.f32 %v944_v29, %v775_v27  ;;  %v918_v31 = vpop.f32.mrf.mxu0  ;;  %v932_v32 = vpop.f32.mrf.mxu1 }
 0x22a   : > { %v919_v33 = vadd.f32 %v918_v31, %v773_v20  ;;  %v933_v34 = vadd.f32 %v932_v32, %v774_v21 }
 0x22b   : > { %v960_v35 = vpack.c.bf16 %v945_v30, %v945_v30 }
 0x22c   : > { %v950_v36 = vmul.f32 0.17677669, %v919_v33  ;;  %v957_v37 = vpack.c.bf16 %v933_v34, %v933_v34 }
 0x22d   : > { %962 = vst.msk [vmem:[#allocation4] sm:$0xf] %vm953_vm13, %v960_v35 }
 0x22e   : > { %v952_v38 = vpack.c.bf16 %v950_v36, %v950_v36  ;;  %959 = vst.msk [vmem:[#allocation3 + $0x4] sm:$0xf] %vm953_vm13, %v957_v37  ;;  %1033 = vrot.lane.b32.xlu2 %v956_v26, %s2969_s16  ;;  %1015 = vrot.lane.b32.xlu0 %v960_v35, %s2967_s1 }
 0x230   : > { %955 = vst.msk [vmem:[#allocation2 + $0x4] sm:$0xf] %vm953_vm13, %v952_v38  ;;  %v946_v39 = vpop.f32.mrf.mxu2  ;;  %979 = vrot.lane.b32.xlu1 %v957_v37, %s2968_s28 }
 0x231   : > { %v947_v40 = vadd.f32 %v946_v39, %v775_v27 }
 0x233   : > { %v961_v41 = vpack.c.bf16 %v947_v40, %v947_v40 }
 0x235   : > { %963 = vst.msk [vmem:[#allocation4 + $0x4] sm:$0xf] %vm953_vm13, %v961_v41 }
 0x236   : > { %999 = vrot.lane.b32.xlu0 %v952_v38, %s2967_s1  ;;  %966 = vrot.lane.b32.xlu2 %v951_v28, %s2968_s28 }
 0x238   : > { %1008 = vrot.lane.b32.xlu1 %v957_v37, %s2967_s1 }
 0x23e   : > { %1026 = vrot.lane.b32.xlu0 %v952_v38, %s2969_s16  ;;  %997 = vrot.lane.b32.xlu2 %v951_v28, %s2967_s1 }
 0x240   : > { %1035 = vrot.lane.b32.xlu1 %v957_v37, %s2969_s16 }
 0x246   : > { %1042 = vrot.lane.b32.xlu0 %v960_v35, %s2969_s16  ;;  %988 = vrot.lane.b32.xlu2 %v960_v35, %s2968_s28 }
 0x24e   : > { %968 = vrot.lane.b32.xlu2 %v952_v38, %s2968_s28 }
 0x256   : > { %990 = vrot.lane.b32.xlu2 %v961_v41, %s2968_s28 }
 0x25e   : > { %1017 = vrot.lane.b32.xlu2 %v961_v41, %s2967_s1 }
 0x266   : > { %1044 = vrot.lane.b32.xlu2 %v961_v41, %s2969_s16 }
 0x280   : > { %v1007_v42 = vpop.permute.xlu2 %1006 }
 0x281   : > { %1013 = vst.msk [vmem:[#allocation3 + $0x10] sm:$0xf] %vm953_vm13, %v1007_v42 }
 0x288   : > { %v1034_v43 = vpop.permute.xlu2 %1033 }
 0x289   : > { %1040 = vst.msk [vmem:[#allocation3 + $0x18] sm:$0xf] %vm953_vm13, %v1034_v43 }
 0x290   : > { %v967_v44 = vpop.permute.xlu2 %966 }
 0x291   : > { %973 = vst.msk [vmem:[#allocation2 + $0x8] sm:$0xf] %vm953_vm13, %v967_v44 }
 0x298   : > { %v978_v45 = vpop.permute.xlu0 %977  ;;  %v998_v46 = vpop.permute.xlu2 %997 }
 0x299   : > { %984 = vst.msk [vmem:[#allocation3 + $0x8] sm:$0xf] %vm953_vm13, %v978_v45 }
 0x29a   : > { %1004 = vst.msk [vmem:[#allocation2 + $0x10] sm:$0xf] %vm953_vm13, %v998_v46  ;;  %v1025_v47 = vpop.permute.xlu1 %1024 }
 0x29b   : > { %1031 = vst.msk [vmem:[#allocation2 + $0x18] sm:$0xf] %vm953_vm13, %v1025_v47 }
 0x2a0   : > { %v1016_v49 = vpop.permute.xlu0 %1015  ;;  %v989_v50 = vpop.permute.xlu2 %988 }
 0x2a1   : > { %1022 = vst.msk [vmem:[#allocation4 + $0x10] sm:$0xf] %vm953_vm13, %v1016_v49 }
 0x2a2   : > { %995 = vst.msk [vmem:[#allocation4 + $0x8] sm:$0xf] %vm953_vm13, %v989_v50  ;;  %v980_v51 = vpop.permute.xlu1 %979 }
 0x2a3   : > { %985 = vst.msk [vmem:[#allocation3 + $0xc] sm:$0xf] %vm953_vm13, %v980_v51 }
 0x2a8   : > { %v1000_v52 = vpop.permute.xlu0 %999  ;;  %v969_v53 = vpop.permute.xlu2 %968 }
 0x2a9   : > { %1005 = vst.msk [vmem:[#allocation2 + $0x14] sm:$0xf] %vm953_vm13, %v1000_v52 }
 0x2aa   : > { %974 = vst.msk [vmem:[#allocation2 + $0xc] sm:$0xf] %vm953_vm13, %v969_v53  ;;  %v1009_v54 = vpop.permute.xlu1 %1008 }
 0x2ab   : > { %1014 = vst.msk [vmem:[#allocation3 + $0x14] sm:$0xf] %vm953_vm13, %v1009_v54 }
 0x2b0   : > { %v1027_v55 = vpop.permute.xlu0 %1026  ;;  %v991_v48 = vpop.permute.xlu2 %990 }
 0x2b1   : > { %1032 = vst.msk [vmem:[#allocation2 + $0x1c] sm:$0xf] %vm953_vm13, %v1027_v55 }
 0x2b2   : > { %996 = vst.msk [vmem:[#allocation4 + $0xc] sm:$0xf] %vm953_vm13, %v991_v48  ;;  %v1036_v56 = vpop.permute.xlu1 %1035 }
 0x2b3   : > { %1041 = vst.msk [vmem:[#allocation3 + $0x1c] sm:$0xf] %vm953_vm13, %v1036_v56 }
 0x2b8   : > { %v1043_v57 = vpop.permute.xlu0 %1042  ;;  %v1018_v58 = vpop.permute.xlu2 %1017 }
 0x2b9   : > { %1049 = vst.msk [vmem:[#allocation4 + $0x18] sm:$0xf] %vm953_vm13, %v1043_v57 }
 0x2ba   : > { %1023 = vst.msk [vmem:[#allocation4 + $0x14] sm:$0xf] %vm953_vm13, %v1018_v58 }
 0x2c0   : > { %v1045_v59 = vpop.permute.xlu2 %1044 }
 0x2c1   : > { %1050 = vst.msk [vmem:[#allocation4 + $0x1c] sm:$0xf] %vm953_vm13, %v1045_v59 }
 0x2c2 PF: > { %v2302_v60 = vld [vmem:[#allocation3] sm:$0xff]  ;;  %s3527_s2 = sld [smem:[#allocation28_spill]]  ;;  %vm1084_vm14 = vcmask 261120   ;;  %v2304_v61 = vld [vmem:[#allocation3 + $0x10] sm:$0xff]  ;;  %v2305_v62 = vld [vmem:[#allocation3 + $0x18] sm:$0xff]  ;;  %vm1176_vm15 = vcmask 130048  }
 0x2c3   : > { %v2303_v63 = vld [vmem:[#allocation3 + $0x8] sm:$0xff]  ;;  %v1089_v0 = vsel %vm1084_vm14, %v2302_v60, 0  ;;  %v1137_v1 = vsel %vm1084_vm14, %v2304_v61, 0  ;;  %v1161_v2 = vsel %vm1084_vm14, %v2305_v62, 0  ;;  %v2308_v45 = vld [vmem:[#allocation4 + $0x10] sm:$0xff]  ;;  %v2306_v49 = vld [vmem:[#allocation4] sm:$0xff] }
 0x2c4   : > { %1098 = vmatpush.bf16.xpose.msra.mxu1 %v1089_v0  ;;  %1146 = vmatpush.bf16.xpose.msra.mxu2 %v1137_v1  ;;  %v1113_v3 = vsel %vm1084_vm14, %v2303_v63, 0  ;;  %v1054_v9 = vld [vmem:[%s559_s13] sm:$0xff]  ;;  %s2970_s4 = smov 64   ;;  %s2971_s9 = smov 32   ;;  %vm1326_vm0 = vcmask 523264   ;;  %vm1328_vm1 = vcmask 785408  }
 0x2c5   : > { %1170 = vmatpush.bf16.xpose.msra.mxu3 %v1161_v2  ;;  %v2307_v47 = vld [vmem:[#allocation4 + $0x8] sm:$0xff]  ;;  %1241 = vmatpush.bf16.msra.mxu0 %v2306_v49  ;;  %s2972_s3 = smov 96   ;;  %s3528_s27 = sld [smem:[#allocation42_spill]]  ;;  %v2331_v49 = vld [vmem:[#allocation16 + $0x64] sm:$0xf0] }
 0x2c6   : > { %s3529_s20 = sld [smem:[#allocation43_spill]]  ;;  %s1775_s7 = sshll.u32 %s639_s26, 4  ;;  %s1776_s7 = int_to_ptr.vmem [resolvable:$true] %s1775_s7 }
 0x2c7   : > { %s3530_s28 = sld [smem:[#allocation44_spill]] }
 0x2c8   : > { %s2070_s11 = sshll.u32 %s3527_s2, 3  ;;  %v2309_v46 = vld [vmem:[#allocation4 + $0x18] sm:$0xff]  ;;  %s3533_s29 = sld [smem:[#allocation48_spill]] }
 0x2c9   : > { %s1055_s19 = sshra.s32 %s2070_s11, 3  ;;  %s1052_s0 = scalar_lea.vmem %s3240_s10, %s2070_s11 [#allocation5] }
 0x2ca   : > { %s2071_s25 = sshll.u32 %s1055_s19, 2  ;;  %s3531_s19 = sld [smem:[#allocation46_spill]] }
 0x2cb   : > { %s1058_s8 = scalar_lea.vmem [#allocation2], %s2071_s25  ;;  %s3532_s25 = sld [smem:[#allocation29_spill]] }
 0x2cc   : > { %1122 = vmatpush.bf16.xpose.msrb.mxu1 %v1113_v3  ;;  %v1059_v4 = vld [vmem:[%s1058_s8] sm:$0xf]  ;;  %v1061_v5 = vld [vmem:[%s1058_s8 + $0x10] sm:$0xf]  ;;  %v1062_v6 = vld [vmem:[%s1058_s8 + $0x18] sm:$0xf]  ;;  %1285 = vmatpush.bf16.msrb.mxu2 %v2308_v45 }
 0x2cd   : > { %2076 = vmatmul.msk.bf16.vlgmr.msra.gmra.mxu1 %vm1084_vm14, %v1059_v4  ;;  %2086 = vmatmul.msk.bf16.vlgmr.msra.gmra.mxu2 %vm1084_vm14, %v1061_v5  ;;  %v1060_v7 = vld [vmem:[%s1058_s8 + $0x8] sm:$0xf]  ;;  %v2204_v45 = vld [vmem:[#allocation16 + $0x78] sm:$0xf0]  ;;  %s3534_s10 = sld [smem:[#allocation49_spill]] }
 0x2ce   : > { %2091 = vmatmul.msk.bf16.vlgmr.msra.gmra.mxu3 %vm1084_vm14, %v1062_v6 }
 0x2cf   : > { %1307 = vmatpush.bf16.msrb.mxu3 %v2309_v46 }
 0x2d1   : > { %s2273_s8 = sshll.u32 %s3532_s25, 1 }
 0x2d3   : > { %s2830_s25 = scalar_lea.hbm %s3534_s10, 32 }
 0x2d4   : > { %1263 = vmatpush.bf16.msra.mxu1 %v2307_v47  ;;  %v2194_v47 = vld [vmem:[#allocation16 + $0x60] sm:$0xf] }
 0x2dd   : > { %2081 = vmatmul.msk.bf16.vlgmr.msrb.gmra.mxu1 %vm1084_vm14, %v1060_v7 }
 0x34a   : > { %v1100_v8 = vpop.f32.mrf.mxu1 }
 0x34b   : > { %v1101_v15 = vadd.f32 %v1100_v8, %v1054_v9 }
 0x34d   : > { %v1177_v24 = vsel %vm1176_vm15, %v1101_v15, -inf }
 0x350   : > { %v1148_v10 = vpop.f32.mrf.mxu2 }
 0x351   : > { %v1149_v12 = vadd.f32 %v1148_v10, %v1054_v9  ;;  %v1172_v13 = vpop.f32.mrf.mxu3  ;;  %v2316_v10 = vld [vmem:[#allocation14 + $0x30] sm:$0xff] }
 0x352   : > { %v1102_v14 = vpop.f32.mrf.mxu1  ;;  %v1173_v17 = vadd.f32 %v1172_v13, %v1054_v9  ;;  %v2314_v13 = vld [vmem:[#allocation14 + $0x20] sm:$0xff] }
 0x353   : > { %v1183_v16 = vsel %vm1176_vm15, %v1149_v12, -inf  ;;  %v2313_v14 = vld [vmem:[#allocation14 + $0x18] sm:$0xff] }
 0x354   : > { %1184 = vmax.xlane.f32.xlu0 %v1183_v16  ;;  %v1186_v11 = vsel %vm1176_vm15, %v1173_v17, -inf  ;;  %v2312_v16 = vld [vmem:[#allocation14 + $0x10] sm:$0xff] }
 0x358   : > { %v1150_v18 = vpop.f32.mrf.mxu2 }
 0x359   : > { %v1174_v19 = vpop.f32.mrf.mxu3  ;;  %v2310_v18 = vld [vmem:[#allocation14] sm:$0xff] }
 0x35a   : > { %v1124_v20 = vpop.f32.mrf.mxu1 }
 0x35b   : > { %v1125_v21 = vadd.f32 %v1124_v20, %v1054_v9  ;;  %v2317_v9 = vld [vmem:[#allocation14 + $0x38] sm:$0xff] }
 0x35c   : > { %1187 = vmax.xlane.f32.xlu0 %v1186_v11  ;;  %1395 = vmatpush.bf16.msrb.mxu0 %v2317_v9  ;;  %v2323_v9 = vld [vmem:[#allocation16 + $0x24] sm:$0xf0] }
 0x35d   : > { %v1180_v22 = vsel %vm1176_vm15, %v1125_v21, -inf }
 0x35e   : > { %1181 = vmax.xlane.f32.xlu1 %v1180_v22 }
 0x360   : > { %1396 = vmatpush.bf16.msrb.mxu0 %v2316_v10 }
 0x362   : > { %v1126_v23 = vpop.f32.mrf.mxu1 }
 0x366   : > { %1178 = vmax.xlane.f32.xlu1 %v1177_v24  ;;  %v1053_v24 = vld [vmem:[%s1052_s0] sm:$0xff] }
 0x3c7   : > { %v1185_v25 = vpop.xlane.xlu0 %1184 }
 0x3c8   : > { %v1191_v26 = vsub.f32 %v1149_v12, %v1185_v25  ;;  %v2315_v12 = vld [vmem:[#allocation14 + $0x28] sm:$0xff] }
 0x3c9   : > { %1397 = vmatpush.bf16.msrb.mxu0 %v2315_v12  ;;  %v2544_v25 = vld [vmem:[%s3528_s27] ss:$0 sm:$0xff]  ;;  %v2322_v12 = vld [vmem:[#allocation16 + $0x24] sm:$0xf] }
 0x3ca   : > { %v1197_v27 = vmul.f32 1.442695, %v1191_v26 }
 0x3cc   : > { %2548 = vpow2.f32 %v1197_v27 }
 0x3cd   : > { %1398 = vmatpush.bf16.msrb.mxu0 %v2314_v13  ;;  %v2164_v13 = vld [vmem:[#allocation16 + $0x28] sm:$0xf0] }
 0x3cf   : > { %v1188_v28 = vpop.xlane.xlu0 %1187 }
 0x3d0   : > { %v1192_v29 = vsub.f32 %v1173_v17, %v1188_v28  ;;  %v2311_v17 = vld [vmem:[#allocation14 + $0x8] sm:$0xff] }
 0x3d1   : > { %v1182_v30 = vpop.xlane.xlu1 %1181  ;;  %1399 = vmatpush.bf16.msrb.mxu0 %v2313_v14 }
 0x3d2   : > { %v2549_v31 = vpop.eup %2548  ;;  %v1199_v32 = vmul.f32 1.442695, %v1192_v29  ;;  %v1190_v33 = vsub.f32 %v1125_v21, %v1182_v30  ;;  %v2973_v30 = vmov 128.0  }
 0x3d3   : > { %v1207_v34 = vsel %vm1176_vm15, %v2549_v31, 0.0 }
 0x3d4   : > { %2550 = vpow2.f32 %v1199_v32  ;;  %v1195_v35 = vmul.f32 1.442695, %v1190_v33  ;;  %1208 = vadd.xlane.f32.xlu2 %v1207_v34 }
 0x3d5   : > { %1400 = vmatpush.bf16.msrb.mxu0 %v2312_v16  ;;  %v2167_v16 = vor.u32 %v2322_v12, %v2164_v13 }
 0x3d6   : > { %2552 = vpow2.f32 %v1195_v35 }
 0x3d9   : > { %v1179_v36 = vpop.xlane.xlu1 %1178  ;;  %1401 = vmatpush.bf16.msrb.mxu0 %v2311_v17  ;;  %v2154_v17 = vld [vmem:[#allocation16 + $0x10] sm:$0xf] }
 0x3da   : > { %v2551_v37 = vpop.eup %2550  ;;  %v1189_v38 = vsub.f32 %v1101_v15, %v1179_v36 }
 0x3db   : > { %v1210_v39 = vsel %vm1176_vm15, %v2551_v37, 0.0 }
 0x3dc   : > { %v2553_v40 = vpop.eup %2552  ;;  %v1193_v41 = vmul.f32 1.442695, %v1189_v38  ;;  %1211 = vadd.xlane.f32.xlu2 %v1210_v39 }
 0x3dd   : > { %v1204_v42 = vsel %vm1176_vm15, %v2553_v40, 0.0  ;;  %1402 = vmatpush.bf16.msrb.mxu0 %v2310_v18  ;;  %v2321_v18 = vld [vmem:[#allocation16 + $0x14] sm:$0xf0] }
 0x3de   : > { %2554 = vpow2.f32 %v1193_v41  ;;  %1205 = vadd.xlane.f32.xlu0 %v1204_v42  ;;  %v2202_v41 = vld [vmem:[#allocation16 + $0x70] sm:$0xf]  ;;  %v2333_v42 = vld [vmem:[#allocation16 + $0x74] sm:$0xf0] }
 0x3e4   : > { %v2555_v43 = vpop.eup %2554 }
 0x3e5   : > { %v1201_v44 = vsel %vm1176_vm15, %v2555_v43, 0.0 }
 0x3e6   : > { %1202 = vadd.xlane.f32.xlu1 %v1201_v44  ;;  %v2203_v44 = vor.u32 %v2333_v42, %v2202_v41 }
 0x3e8   : > { %1570 = vmatpush.bf16.msrb.mxu1 %v2203_v44  ;;  %v2347_v44 = vld [vmem:[#allocation17 + $0x68] sm:$0xff] }
 0x447   : > { %v1209_v50 = vpop.xlane.xlu2 %1208 }
 0x448   : > { %2556 = vrcp.f32 %v1209_v50  ;;  %v2330_v50 = vld [vmem:[#allocation16 + $0x64] sm:$0xf] }
 0x44e   : > { %v2557_v51 = vpop.eup %2556 }
 0x44f   : > { %v1219_v52 = vmul.f32 %v2557_v51, %v2549_v31  ;;  %v1212_v53 = vpop.xlane.xlu2 %1211  ;;  %v2195_v51 = vor.u32 %v2331_v49, %v2194_v47  ;;  %v2346_v47 = vld [vmem:[#allocation17 + $0x60] sm:$0xff]  ;;  %v2337_v49 = vld [vmem:[#allocation17 + $0x18] sm:$0xff] }
 0x450   : > { %2558 = vrcp.f32 %v1212_v53 }
 0x451   : > { %v1206_v54 = vpop.xlane.xlu0 %1205  ;;  %v1223_v55 = vpack.c.bf16 %v1219_v52, %v1219_v52  ;;  %v2196_v52 = vld [vmem:[#allocation16 + $0x68] sm:$0xf0]  ;;  %1571 = vmatpush.bf16.msrb.mxu1 %v2195_v51 }
 0x452   : > { %2560 = vrcp.f32 %v1206_v54  ;;  %v2199_v53 = vor.u32 %v2330_v50, %v2196_v52  ;;  %v2186_v54 = vld [vmem:[#allocation16 + $0x50] sm:$0xf]  ;;  %v2345_v50 = vld [vmem:[#allocation17 + $0x58] sm:$0xff] }
 0x453   : > { %2106 = vmatmul.msk.bf16.vlgmr.msrb.gmra.mxu2 %vm1176_vm15, %v1223_v55  ;;  %v2329_v55 = vld [vmem:[#allocation16 + $0x54] sm:$0xf0] }
 0x456   : > { %v2559_v48 = vpop.eup %2558 }
 0x457   : > { %v1220_v56 = vmul.f32 %v2559_v48, %v2551_v37  ;;  %v2328_v48 = vld [vmem:[#allocation16 + $0x54] sm:$0xf] }
 0x458   : > { %v2561_v57 = vpop.eup %2560 }
 0x459   : > { %v1218_v58 = vmul.f32 %v2561_v57, %v2553_v40  ;;  %v1203_v59 = vpop.xlane.xlu1 %1202  ;;  %v1224_v60 = vpack.c.bf16 %v1220_v56, %v1220_v56  ;;  %v2187_v56 = vor.u32 %v2329_v55, %v2186_v54  ;;  %v2188_v57 = vld [vmem:[#allocation16 + $0x58] sm:$0xf0]  ;;  %v2336_v54 = vld [vmem:[#allocation17 + $0x10] sm:$0xff] }
 0x45a   : > { %2562 = vrcp.f32 %v1203_v59  ;;  %v2178_v59 = vld [vmem:[#allocation16 + $0x40] sm:$0xf] }
 0x45b   : > { %v1222_v61 = vpack.c.bf16 %v1218_v58, %v1218_v58  ;;  %2111 = vmatmul.msk.bf16.vlgmr.msrb.gmra.mxu3 %vm1176_vm15, %v1224_v60  ;;  %2564 = vrcp.f32 %v2973_v30  ;;  %v2191_v58 = vor.u32 %v2328_v48, %v2188_v57  ;;  %v2327_v60 = vld [vmem:[#allocation16 + $0x44] sm:$0xf0]  ;;  %1572 = vmatpush.bf16.msrb.mxu1 %v2187_v56  ;;  %v2545_v48 = vld [vmem:[%s3529_s20] ss:$0 sm:$0xff] }
 0x45d   : > { %2101 = vmatmul.msk.bf16.vlgmr.msra.gmra.mxu1 %vm1176_vm15, %v1222_v61  ;;  %v2326_v61 = vld [vmem:[#allocation16 + $0x44] sm:$0xf] }
 0x460   : > { %v2563_v62 = vpop.eup %2562 }
 0x461   : > { %v1217_v63 = vmul.f32 %v2563_v62, %v2555_v43  ;;  %v2565_v31 = vpop.eup %2564  ;;  %v2332_v43 = vld [vmem:[#allocation16 + $0x74] sm:$0xf]  ;;  %v2180_v62 = vld [vmem:[#allocation16 + $0x48] sm:$0xf0] }
 0x462   : > { %v1419_v32 = vmul.f32 128.0, %v2565_v31  ;;  %vm1423_vm2 = vweird.f32 %v2565_v31  ;;  %v2207_v46 = vor.u32 %v2332_v43, %v2204_v45  ;;  %v2339_v43 = vld [vmem:[#allocation17 + $0x28] sm:$0xff] }
 0x463   : > { %v1221_v0 = vpack.c.bf16 %v1217_v63, %v1217_v63  ;;  %v2179_v63 = vor.u32 %v2327_v60, %v2178_v59 }
 0x464   : > { %v1420_v33 = vsub.f32 1.0, %v1419_v32  ;;  %1583 = vmatpush.bf16.msra.mxu2 %v2207_v46  ;;  %v2338_v46 = vld [vmem:[#allocation17 + $0x20] sm:$0xff] }
 0x465   : > { %2096 = vmatmul.msk.bf16.vlgmr.msra.gmra.mxu0 %vm1176_vm15, %v1221_v0  ;;  %v2183_v0 = vor.u32 %v2326_v61, %v2180_v62  ;;  %1573 = vmatpush.bf16.msrb.mxu1 %v2179_v63  ;;  %v2546_v62 = vld [vmem:[%s3530_s28] ss:$0 sm:$0xff] }
 0x466   : > { %v1421_v34 = vmul.f32 %v2565_v31, %v1420_v33  ;;  %v2341_v33 = vld [vmem:[#allocation17 + $0x38] sm:$0xff] }
 0x467   : > { %1732 = vmatpush.bf16.msra.mxu3 %v2341_v33 }
 0x468   : > { %v1422_v35 = vadd.f32 %v2565_v31, %v1421_v34  ;;  %1584 = vmatpush.bf16.msra.mxu2 %v2199_v53  ;;  %v2349_v34 = vld [vmem:[#allocation17 + $0x78] sm:$0xff] }
 0x469   : > { %1745 = vmatpush.bf16.msra.mxu0 %v2349_v34 }
 0x46a   : > { %v1424_v36 = vsel %vm1423_vm2, %v2565_v31, %v1422_v35 }
 0x46c   : > { %1585 = vmatpush.bf16.msra.mxu2 %v2191_v58 }
 0x470   : > { %1586 = vmatpush.bf16.msra.mxu2 %v2183_v0 }
 0x4d6   : > { %v1287_v1 = vpop.f32.mrf.mxu2 }
 0x4d7   : > { %1318 = vrot.lane.b32.xlu0 %v1287_v1, %s2970_s4  ;;  %v2170_v1 = vld [vmem:[#allocation16 + $0x30] sm:$0xf]  ;;  %s1771_s4 = sadd.s32 %s3527_s2, %s2273_s8  ;;  %s1761_s2 = scalar_lea.sflag [#allocation7], %s557_s6 }
 0x4da   : > { %v1265_v2 = vpop.f32.mrf.mxu1 }
 0x4db   : > { %1314 = vrot.lane.b32.xlu2 %v1265_v2, %s2971_s9  ;;  %v2325_v2 = vld [vmem:[#allocation16 + $0x34] sm:$0xf0]  ;;  %s2274_s9 = sshll.u32 %s1771_s4, 3 }
 0x4dc   : > { %s1773_s24 = scalar_lea.hbm %s3534_s10, %s2274_s9 }
 0x4dd   : > { %s1777_s1 = sshll.u32 %s1773_s24, 4  ;;  %s1778_s1 = int_to_ptr.hbm [resolvable:$true] %s1777_s1 }
 0x4de   : > { %v1289_v3 = vpop.f32.mrf.mxu2  ;;  %v1309_v4 = vpop.f32.mrf.mxu3  ;;  %s2824_s28 = sshra.s32 %s1778_s1, 4  ;;  %s2825_s28 = int_to_ptr.hbm [resolvable:$true] %s2824_s28 }
 0x4df   : > { %1322 = vrot.lane.b32.xlu1 %v1309_v4, %s2972_s3  ;;  %v2324_v3 = vld [vmem:[#allocation16 + $0x34] sm:$0xf]  ;;  %v2172_v4 = vld [vmem:[#allocation16 + $0x38] sm:$0xf0]  ;;  %s2826_s16 = scalar_lea.hbm %s2825_s28, 8  ;;  %p2831_p1 = scmp.lt.s32.totalorder %s2825_s28, %s3534_s10 }
 0x4e0   : > { %p2827_p10 = scmp.ne.s32.totalorder %s2825_s28, %s2826_s16  ;;  %p2832_p3 = scmp.lt.s32.totalorder %s2830_s25, %s2826_s16 }
 0x4e2   : > { %v1243_v5 = vpop.f32.mrf.mxu0  ;;  %v1267_v6 = vpop.f32.mrf.mxu1  ;;  %p2828_p13 = pnand %p2827_p10, %p3208_p12  ;;  %p2833_p9 = por %p2832_p3, %p2831_p1 }
 0x4e4   : > { %p2829_p0 = pneg %p2828_p13 }
 0x4e6   : > { %v1311_v7 = vpop.f32.mrf.mxu3  ;;  %p2834_p11 = pnand %p2833_p9, %p2829_p0 }
 0x4e7   : > { %v2175_v7 = vor.u32 %v2324_v3, %v2172_v4  ;;  %v2335_v3 = vld [vmem:[#allocation17 + $0x8] sm:$0xff]  ;;  %v2344_v4 = vld [vmem:[#allocation17 + $0x50] sm:$0xff] }
 0x4e9   : > { %1587 = vmatpush.bf16.msra.mxu2 %v2175_v7  ;;  %v1484_v7 = vld [vmem:[%s3531_s19] sm:$0x3] }
 0x4ea   : > { %v1245_v8 = vpop.f32.mrf.mxu0  ;;  %v1487_v13 = vperm.slane %v1484_v7, 1 }
 0x4eb   : > { %v2162_v8 = vld [vmem:[#allocation16 + $0x20] sm:$0xf] }
 0x4ec   : > { %v2163_v14 = vor.u32 %v2323_v9, %v2162_v8  ;;  %v1486_v8 = vperm.slane %v1484_v7, 0 }
 0x4ed   : > { %1588 = vmatpush.bf16.msra.mxu2 %v2167_v16 }
 0x535   : > { %v1315_v19 = vpop.permute.xlu2 %1314 }
 0x536   : > { %v1325_v20 = vsel %vm1084_vm14, %v1243_v5, %v1315_v19  ;;  %v2171_v5 = vor.u32 %v2325_v2, %v2170_v1  ;;  %v2320_v19 = vld [vmem:[#allocation16 + $0x14] sm:$0xf] }
 0x538   : > { %1574 = vmatpush.bf16.msrb.mxu1 %v2171_v5  ;;  %v2334_v5 = vld [vmem:[#allocation17] sm:$0xff] }
 0x53c   : > { %1575 = vmatpush.bf16.msrb.mxu1 %v2163_v14 }
 0x549   : > { %v1319_v11 = vpop.permute.xlu0 %1318 }
 0x54a   : > { %v1327_v21 = vsel %vm1326_vm0, %v1325_v20, %v1319_v11  ;;  %v2156_v11 = vld [vmem:[#allocation16 + $0x18] sm:$0xf0]  ;;  %v2155_v20 = vor.u32 %v2321_v18, %v2154_v17 }
 0x54c   : > { %1576 = vmatpush.bf16.msrb.mxu1 %v2155_v20 }
 0x551   : > { %v1323_v22 = vpop.permute.xlu1 %1322 }
 0x552   : > { %v1329_v15 = vsel %vm1328_vm1, %v1327_v21, %v1323_v22  ;;  %v2159_v21 = vor.u32 %v2320_v19, %v2156_v11  ;;  %v2146_v22 = vld [vmem:[#allocation16] sm:$0xf] }
 0x553   : > { %v1330_v23 = vpack.c.bf16 %v1329_v15, %v1329_v15  ;;  %v2319_v15 = vld [vmem:[#allocation16 + $0x4] sm:$0xf0] }
 0x554   : > { %1589 = vmatpush.bf16.msra.mxu2 %v2159_v21  ;;  %v2547_v21 = vld [vmem:[%s3533_s29] ss:$0 sm:$0xff] }
 0x555   : > { %1403 = vmatmul.bf16.vlgmr.msrb.gmra.mxu0 %v1330_v23 }
 0x5d2   : > { %v1404_v26 = vpop.f32.mrf.mxu0 }
 0x5d3   : > { %v1408_v27 = vadd.f32 %v1404_v26, %v1053_v24  ;;  %v2318_v24 = vld [vmem:[#allocation16 + $0x4] sm:$0xf] }
 0x5d5   : > { %v3373_v28 = vadd.f32 %v2544_v25, %v1408_v27  ;;  %v2148_v25 = vld [vmem:[#allocation16 + $0x8] sm:$0xf0]  ;;  %v2147_v27 = vor.u32 %v2319_v15, %v2146_v22 }
 0x5d6   : > { %v2151_v30 = vor.u32 %v2318_v24, %v2148_v25 }
 0x5d7   : > { %1416 = vadd.xlane.f32.xlu2 %v3373_v28  ;;  %1577 = vmatpush.bf16.msrb.mxu1 %v2147_v27 }
 0x5d8   : > { %1590 = vmatpush.bf16.msra.mxu2 %v2151_v30 }
 0x5da   : > { %v1406_v29 = vpop.f32.mrf.mxu0 }
 0x64a   : > { %v1417_v37 = vpop.xlane.xlu2 %1416 }
 0x64b   : > { %v1425_v38 = vmul.f32 %v1424_v36, %v1417_v37  ;;  %v2340_v36 = vld [vmem:[#allocation17 + $0x30] sm:$0xff] }
 0x64c   : > { %v2348_v37 = vld [vmem:[#allocation17 + $0x70] sm:$0xff]  ;;  %1733 = vmatpush.bf16.msra.mxu3 %v2340_v36 }
 0x64d   : > { %v3377_v39 = vsub.f32 %v3373_v28, %v1425_v38  ;;  %1746 = vmatpush.bf16.msra.mxu0 %v2348_v37 }
 0x64f   : > { %v1427_v40 = vmul.f32 %v3377_v39, %v3377_v39  ;;  %v1461_v60 = vmul.f32 %v2545_v48, %v3377_v39  ;;  %v2342_v39 = vld [vmem:[#allocation17 + $0x40] sm:$0xff] }
 0x650   : > { %1734 = vmatpush.bf16.msra.mxu3 %v2339_v43 }
 0x651   : > { %1428 = vadd.xlane.f32.xlu0 %v1427_v40  ;;  %1747 = vmatpush.bf16.msra.mxu0 %v2347_v44 }
 0x654   : > { %1735 = vmatpush.bf16.msra.mxu3 %v2338_v46 }
 0x655   : > { %1748 = vmatpush.bf16.msra.mxu0 %v2346_v47 }
 0x658   : > { %1736 = vmatpush.bf16.msra.mxu3 %v2337_v49 }
 0x659   : > { %1749 = vmatpush.bf16.msra.mxu0 %v2345_v50 }
 0x65c   : > { %1737 = vmatpush.bf16.msra.mxu3 %v2336_v54 }
 0x65d   : > { %1750 = vmatpush.bf16.msra.mxu0 %v2344_v4 }
 0x660   : > { %1738 = vmatpush.bf16.msra.mxu3 %v2335_v3 }
 0x664   : > { %1739 = vmatpush.bf16.msra.mxu3 %v2334_v5 }
 0x6c4   : > { %v1429_v6 = vpop.xlane.xlu0 %1428 }
 0x6c5   : > { %v1430_v10 = vmul.f32 0.007874016, %v1429_v6  ;;  %v2343_v6 = vld [vmem:[#allocation17 + $0x48] sm:$0xff] }
 0x6c6   : > { %1751 = vmatpush.bf16.msra.mxu0 %v2343_v6 }
 0x6c7   : > { %2566 = vrsqrt.f32 %v1430_v10  ;;  %vm1438_vm3 = vcmp.eq.f32.partialorder %v1430_v10, inf  ;;  %v1441_v40 = vand.u32 2147483648, %v1430_v10  ;;  %vm1440_vm4 = vcmp.eq.f32.partialorder %v1430_v10, 0.0 }
 0x6ca   : > { %1752 = vmatpush.bf16.msra.mxu0 %v2342_v39 }
 0x6cd   : > { %v2567_v23 = vpop.eup %2566 }
 0x6ce   : > { %v1432_v26 = vmul.f32 %v2567_v23, %v1430_v10 }
 0x6d0   : > { %v1433_v29 = vmul.f32 %v2567_v23, %v1432_v26 }
 0x6d2   : > { %v1434_v31 = vmul.f32 0.5, %v1433_v29 }
 0x6d4   : > { %v1435_v32 = vsub.f32 1.5, %v1434_v31 }
 0x6d6   : > { %v1436_v35 = vmul.f32 %v2567_v23, %v1435_v32 }
 0x6d8   : > { %v1437_v38 = vmul.f32 %v1436_v35, %v1430_v10 }
 0x6da   : > { %v1439_v41 = vsel %vm1438_vm3, %v1430_v10, %v1437_v38 }
 0x6db   : > { %v1442_v42 = vsel %vm1440_vm4, %v1441_v40, %v1439_v41 }
 0x6dc   : > { %v1443_v45 = vadd.f32 1e-06, %v1442_v42 }
 0x6de   : > { %2568 = vrcp.f32 %v1443_v45  ;;  %v1455_v55 = vand.u32 2147483648, %v1443_v45  ;;  %v1453_v57 = vand.u32 2147483647, %v1443_v45  ;;  %vm1449_vm6 = vweird.f32 %v1443_v45 }
 0x6e0   : > { %v1456_v59 = vor.u32 1.1754944e-38, %v1455_v55  ;;  %vm1454_vm8 = vcmp.eq.f32.partialorder %v1453_v57, 8.507059e+37 }
 0x6e4   : > { %v2569_v51 = vpop.eup %2568 }
 0x6e5   : > { %v1445_v52 = vmul.f32 %v2569_v51, %v1443_v45  ;;  %vm1450_vm5 = vweird.f32 %v2569_v51 }
 0x6e6   : > { %vm1451_vm7 = vmor %vm1449_vm6, %vm1450_vm5 }
 0x6e7   : > { %v1446_v53 = vsub.f32 1.0, %v1445_v52 }
 0x6e9   : > { %v1447_v56 = vmul.f32 %v2569_v51, %v1446_v53 }
 0x6eb   : > { %v1448_v58 = vadd.f32 %v2569_v51, %v1447_v56 }
 0x6ed   : > { %v1452_v61 = vsel %vm1451_vm7, %v2569_v51, %v1448_v58 }
 0x6ee   : > { %v1457_v63 = vsel %vm1454_vm8, %v1456_v59, %v1452_v61 }
 0x6ef   : > { %v1462_v0 = vmul.f32 %v1461_v60, %v1457_v63 }
 0x6f1   : > { %v1466_v1 = vadd.f32 %v2546_v62, %v1462_v0 }
 0x6f3   : > { %v1467_v2 = vpack.c.bf16 %v1466_v1, %v1466_v1 }
 0x6f5   : > { %1578 = vmatmul.bf16.vlgmr.msrb.gmra.mxu1 %v1467_v2  ;;  %1591 = vmatmul.bf16.vlgmr.msra.gmra.mxu2 %v1467_v2 }
 0x772   : > { %v1579_v9 = vpop.f32.mrf.mxu1 }
 0x773   : > { %v1580_v10 = vadd.f32 %v1579_v9, %v1486_v8 }
 0x775   : > { %v1596_v12 = vmax.f32 %v1580_v10, 0.0 }
 0x777   : > { %v1598_v14 = vpack.c.bf16 %v1596_v12, %v1596_v12 }
 0x778   : > { %v1592_v16 = vpop.f32.mrf.mxu2 }
 0x779   : > { %v1593_v17 = vadd.f32 %v1592_v16, %v1487_v13  ;;  %1740 = vmatmul.bf16.vlgmr.msra.gmra.mxu3 %v1598_v14 }
 0x77a   : > { %v1581_v18 = vpop.f32.mrf.mxu1 }
 0x77b   : > { %v1597_v19 = vmax.f32 %v1593_v17, 0.0 }
 0x77d   : > { %v1599_v11 = vpack.c.bf16 %v1597_v19, %v1597_v19 }
 0x77f   : > { %1753 = vmatmul.bf16.vlgmr.msra.gmra.mxu0 %v1599_v11 }
 0x780   : > { %v1594_v20 = vpop.f32.mrf.mxu2 }
 0x7fc   : > { %v1741_v22 = vpop.f32.mrf.mxu3  ;;  %v1754_v15 = vpop.f32.mrf.mxu0 }
 0x7fd   : > { %v1742_v23 = vadd.f32 %v2547_v21, %v1741_v22 }
 0x7ff   : > { %v1755_v24 = vadd.f32 %v1754_v15, %v1742_v23 }
 0x801   : > { %v1758_v25 = vadd.f32 %v1755_v24, %v3373_v28 }
 0x803   : > { %1759 = vst [vmem:[%s639_s26] sm:$0xff] %v1758_v25 }
 0x804   : > { %v1743_v26 = vpop.f32.mrf.mxu3  ;;  %v1756_v27 = vpop.f32.mrf.mxu0 }
 0x805   : > { %2837 = shalt.err (!%p2834_p11)
}
 0x806   : > { %2378 = dma.vmem_to_hbm [thread:$0]  (%p3208_p12), %s1776_s7, 128, %s1778_s1, %s1761_s2  }
 0x807 PF: > { %s3536_s6 = sld [smem:[#allocation27_spill]]  ;;  %p2423_p2 = scmp.ge.s32.totalorder %s2952_s23, 2 }
 0x809   : > { %p2407_p4 = pnand %p2423_p2, %p3212_p7 }
 0x80b   : > { %p2408_p5 = pneg %p2407_p4 }
 0x80d   : > { %s1789_s26 = sand.u32 1, %s3536_s6  }
 0x80e   : > { %s1790_s9 = scalar_lea.sflag [#allocation7], %s1789_s26 }
 0x80f   : > { %2907 = dma.done.wait (%p2408_p5), %s1790_s9, 128  }
 0x810   : > { %2909 = vsyncadd (%p2408_p5), %s1790_s9, 4294967168  ;;  %s36_s23 = sadd.s32 1, %s2952_s23   ;;  %s3538_s3 = sld [smem:[#allocation31_spill]] }
 0x811   : > { %p33_p6 = scmp.ge.s32.totalorder %s36_s23, 6   ;;  %s3539_s0 = sld [smem:[#allocation32_spill]] }
 0x812   : > { %s3540_s29 = smov %s2916_s30  ;;  %s3541_s30 = smov %s2920_s15 }
 0x813   : > { %s3542_s15 = smov %s3225_s14  ;;  %s3543_s16 = smov %s2928_s17 }
 0x814   : > { %s3544_s17 = smov %s2932_s18  ;;  %s3545_s18 = smov %s3222_s5 }
 0x815   : > { %s3546_s19 = smov %s2944_s21  ;;  %s3547_s20 = smov %s2948_s22 }
 0x816   : > { %s3548_s21 = smov %s3538_s3  ;;  %35 = sbr.rel (!%p33_p6) target bundleno = 30 (0x1e), region = 173 }
 0x817   : > { %s3549_s22 = smov %s3539_s0 }
 0x81b   :  { %1796 = vsyncpa [#allocation6], 1 }
 0x81c   :  { %1798 = vsyncpa [#allocation6 + $0x1], 1 }
 0x81d   :  { %1799 = vsyncpa [#allocation9], 1 }
 0x81e   :  { %1801 = vsyncpa [#allocation9 + $0x1], 1 }
 0x81f   :  { %1802 = vsyncpa [#allocation12], 1 }
 0x820   :  { %1803 = vsyncpa [#allocation15], 1 }
 0x821   :  { %1804 = vsyncpa [#allocation18], 1 }
 0x822   :  { %1805 = vsyncpa [#allocation7], 1 }
 0x823   :  { %1807 = vsyncpa [#allocation7 + $0x1], 1 }

</bundles_post_ra>
